<compile_context>
chip_gen: v5e
topology: v5e:2x2
jax: 0.10.0
libtpu: 0.0.40
codegen_flags: <defaults>
</compile_context>

<pallas_src>
import functools

import jax
import jax.numpy as jnp
from jax.experimental import pallas as pl
from jax.experimental.pallas import tpu as pltpu

LN_EPS = 1e-5


def _round_up(n, m):
    return ((n + m - 1) // m) * m


def _physical_vmem_bytes():
    """Best-effort physical VMEM query; conservative (v7x) fallback."""
    try:
        info = pltpu.get_tpu_info()
        cap = getattr(info, "vmem_capacity_bytes", None)
        if cap:
            return int(cap)
    except Exception:
        pass
    return 64 << 20


def _vmem_bytes(tm, th, D, w_bytes, out_bytes):
    """Conservative VMEM estimate (all pipeline blocks counted double-buffered)."""
    dbl = 2
    return (dbl * tm * D * 4               # x block (f32 in)
            + dbl * tm * D * out_bytes     # out block
            + dbl * 2 * D * 4              # packed LayerNorm gamma/beta
            + dbl * 2 * D * th * w_bytes   # w_val + w_gate slices
            + dbl * 2 * th * 4             # packed b1 slice
            + dbl * th * D * w_bytes       # w2 slice
            + dbl * D * 4                  # b2
            + tm * D * w_bytes             # xn scratch (bf16)
            + tm * D * 4)                  # f32 output accumulator scratch


def _choose_tiles(N, D, H, tile_m, tile_h, w_bytes, out_bytes, vmem_budget):
    """Pick (tm, th): prefer weight-resident th=H, then MXU-aligned divisors."""
    if tile_h is not None and tile_h < H and H % tile_h == 0 and tile_h % 128 == 0:
        th_cands = [tile_h]                          # explicit override (tests)
    else:
        th_cands = [H] + [t for t in (2048, 1024, 512, 256, 128)
                          if t < H and H % t == 0]
    tm = min(_round_up(tile_m, 16), _round_up(max(N, 1), 16))
    while True:
        for th in th_cands:
            if _vmem_bytes(tm, th, D, w_bytes, out_bytes) <= vmem_budget:
                return tm, th
        if tm <= 16:
            return 16, th_cands[-1]
        tm = max(16, _round_up(tm // 2, 16))


def _ff_kernel(x_ref, ln_ref, wv_ref, wg_ref, b1_ref, w2_ref, b2_ref,
               o_ref, xn_sc, acc_sc, *, matmul_dtype, approx_gelu):
    k = pl.program_id(1)
    nk = pl.num_programs(1)

    # --- first hidden step: LayerNorm once per token tile, init accumulator ---
    @pl.when(k == 0)
    def _():
        x = x_ref[...].astype(jnp.float32)                       # (TM, D)
        mean = jnp.mean(x, axis=-1, keepdims=True)
        var = jnp.mean(jnp.square(x - mean), axis=-1, keepdims=True)
        xn = (x - mean) * jax.lax.rsqrt(var + LN_EPS)
        xn = xn * ln_ref[0:1, :] + ln_ref[1:2, :]                # gamma / beta
        xn_sc[...] = xn.astype(matmul_dtype)
        acc_sc[...] = jnp.zeros_like(acc_sc)

    xn = xn_sc[...]                                              # (TM, D) bf16

    # --- Linear 1, split into value / gate halves: D -> th each ---------------
    val = jnp.dot(xn, wv_ref[...], preferred_element_type=jnp.float32)
    val = val + b1_ref[0:1, :]                                   # (TM, TH) f32
    gates = jnp.dot(xn, wg_ref[...], preferred_element_type=jnp.float32)
    gates = gates + b1_ref[1:2, :]                               # (TM, TH) f32

    # --- GEGLU (tanh-approx GELU -> EUP by default; erf matches torch exactly)
    geglu = val * jax.nn.gelu(gates, approximate=approx_gelu)

    # --- Linear 2 partial product, accumulate in f32 ---------------------------
    acc_sc[...] += jnp.dot(geglu.astype(matmul_dtype), w2_ref[...],
                           preferred_element_type=jnp.float32)   # (TM, D)

    # --- last hidden step: add bias, write out ---------------------------------
    @pl.when(k == nk - 1)
    def _():
        o_ref[...] = (acc_sc[...] + b2_ref[...]).astype(o_ref.dtype)


def prepare_params(params, matmul_dtype=jnp.bfloat16):
    """One-time weight prep: split value/gate halves, cast to bf16, pack biases."""
    D = params["gamma"].shape[0]
    H = params["w2"].shape[0]
    w1 = params["w1"]                                            # (D, 2H), (in,out)
    return {
        "ln": jnp.stack([params["gamma"], params["beta"]]).astype(jnp.float32),  # (2, D)
        "wv": w1[:, :H].astype(matmul_dtype),                    # (D, H)
        "wg": w1[:, H:].astype(matmul_dtype),                    # (D, H)
        "b1": params["b1"].reshape(2, H).astype(jnp.float32),    # row0=val, row1=gate
        "w2": params["w2"].astype(matmul_dtype),                 # (H, D)
        "b2": params["b2"].reshape(1, D).astype(jnp.float32),    # (1, D)
    }


def feed_forward(x, prep, *, tile_m=1024, tile_h=None,
                 matmul_dtype=jnp.bfloat16, approx_gelu=True, out_dtype=None):
    """x: (B, S, D).  prep: output of prepare_params()."""
    B, S, D = x.shape
    H = prep["w2"].shape[0]
    N = B * S
    out_dtype = x.dtype if out_dtype is None else out_dtype

    w_bytes = jnp.dtype(matmul_dtype).itemsize
    out_bytes = jnp.dtype(out_dtype).itemsize

    phys_vmem = _physical_vmem_bytes()
    vmem_budget = int(phys_vmem * 0.8)

    tm, th = _choose_tiles(N, D, H, tile_m, tile_h, w_bytes, out_bytes,
                           vmem_budget)

    # Weight-resident + single token tile: split it so the parallel axis can
    # feed both v7x TensorCores (harmless on single-TC v5e/v6e).
    n_pad = _round_up(N, tm)
    if th == H and n_pad // tm == 1 and tm >= 32:
        tm = max(16, _round_up(tm // 2, 16))
        n_pad = _round_up(N, tm)

    x2d = x.reshape(N, D)
    if n_pad != N:
        x2d = jnp.pad(x2d, ((0, n_pad - N), (0, 0)))

    kernel = functools.partial(_ff_kernel, matmul_dtype=matmul_dtype,
                               approx_gelu=approx_gelu)

    needed = _vmem_bytes(tm, th, D, w_bytes, out_bytes)
    vmem_limit = int(min(phys_vmem, max(needed + (8 << 20), 32 << 20)))

    cost = pl.CostEstimate(
        flops=6 * n_pad * D * H,                         # 2*N*D*2H + 2*N*H*D
        transcendentals=n_pad * H,                       # gelu (tanh / erf)
        bytes_accessed=(n_pad * D * 4 + n_pad * D * out_bytes   # x in, out
                        + 3 * D * H * w_bytes                   # wv, wg, w2
                        + (2 * H + 3 * D) * 4),                 # biases + LN
    )

    out2d = pl.pallas_call(
        kernel,
        out_shape=jax.ShapeDtypeStruct((n_pad, D), out_dtype),
        grid_spec=pltpu.PrefetchScalarGridSpec(
            num_scalar_prefetch=0,
            grid=(n_pad // tm, H // th),
            in_specs=[
                pl.BlockSpec((tm, D), lambda i, k: (i, 0)),     # x rows
                pl.BlockSpec((2, D), lambda i, k: (0, 0)),      # gamma/beta
                pl.BlockSpec((D, th), lambda i, k: (0, k)),     # w_val slice
                pl.BlockSpec((D, th), lambda i, k: (0, k)),     # w_gate slice
                pl.BlockSpec((2, th), lambda i, k: (0, k)),     # packed b1 slice
                pl.BlockSpec((th, D), lambda i, k: (k, 0)),     # w2 slice
                pl.BlockSpec((1, D), lambda i, k: (0, 0)),      # b2
            ],
            out_specs=pl.BlockSpec((tm, D), lambda i, k: (i, 0)),
            scratch_shapes=[
                pltpu.VMEM((tm, D), matmul_dtype),              # LN output
                pltpu.VMEM((tm, D), jnp.float32),               # out accumulator
            ],
        ),
        compiler_params=pltpu.CompilerParams(
            dimension_semantics=("parallel", "arbitrary"),
            vmem_limit_bytes=vmem_limit),
        cost_estimate=cost,
    )(x2d, prep["ln"], prep["wv"], prep["wg"], prep["b1"], prep["w2"],
      prep["b2"])

    return out2d[:N].reshape(B, S, D)


def init_params(key, dim, mult=4):
    """Deterministic synthetic params matching FeedForward(dim, mult)."""
    H = dim * mult
    k1, k2, k3, k4 = jax.random.split(key, 4)
    return {
        # nn.LayerNorm(dim): weight=ones, bias=zeros by default
        "gamma": jnp.ones((dim,), jnp.float32),
        "beta": jnp.zeros((dim,), jnp.float32),
        # nn.Linear(dim, dim*mult*2): stored here as (in, out)
        "w1": jax.random.normal(k1, (dim, 2 * H), jnp.float32) * 0.02,
        "b1": jax.random.normal(k2, (2 * H,), jnp.float32) * 0.02,
        # nn.Linear(dim*mult, dim): stored here as (in, out)
        "w2": jax.random.normal(k3, (H, dim), jnp.float32) * 0.02,
        "b2": jax.random.normal(k4, (dim,), jnp.float32) * 0.02,
    }


def _reference(x, params):
    """Pure-JAX f32 reference of the PyTorch forward pass (exact erf GELU)."""
    H = params["w2"].shape[0]
    mean = jnp.mean(x, axis=-1, keepdims=True)
    var = jnp.mean(jnp.square(x - mean), axis=-1, keepdims=True)
    xn = (x - mean) / jnp.sqrt(var + LN_EPS)
    xn = xn * params["gamma"] + params["beta"]
    h = xn @ params["w1"] + params["b1"]
    val, gates = h[..., :H], h[..., H:]
    geglu = val * jax.nn.gelu(gates, approximate=False)
    return geglu @ params["w2"] + params["b2"]


if __name__ == "__main__":
    key = jax.random.PRNGKey(0)
    kx, kp, kx2, kp2 = jax.random.split(key, 4)

    # --- test 1: default fast path (auto tiles, weight-resident, tanh gelu) ---
    B, S, DIM, MULT = 2, 64, 128, 4                 # H = 512, N = 128
    x = jax.random.normal(kx, (B, S, DIM), jnp.float32)
    params = init_params(kp, DIM, MULT)
    prep = prepare_params(params)

    out = jax.block_until_ready(feed_forward(x, prep))
    ref = _reference(x, params)
    assert out.shape == (B, S, DIM)
    # bf16 matmul operands + tanh-approx gelu -> loosened tolerance.
    assert jnp.allclose(out, ref, atol=7e-3, rtol=5e-2), "mismatch (test 1)"

    # --- test 2: forced small tiles exercise both grid axes, exact erf gelu ---
    out2 = jax.block_until_ready(
        feed_forward(x, prep, tile_m=64, tile_h=256, approx_gelu=False))
    assert out2.shape == (B, S, DIM)
    assert jnp.allclose(out2, ref, atol=5e-3, rtol=5e-2), "mismatch (test 2)"

    # --- test 3: ragged token count exercises padding path --------------------
    B3, S3 = 2, 5                                    # N = 10 -> padded to 16
    x3 = jax.random.normal(kx2, (B3, S3, DIM), jnp.float32)
    params3 = init_params(kp2, DIM, MULT)
    prep3 = prepare_params(params3)
    out3 = jax.block_until_ready(feed_forward(x3, prep3))
    ref3 = _reference(x3, params3)
    assert out3.shape == (B3, S3, DIM)
    assert jnp.allclose(out3, ref3, atol=7e-3, rtol=5e-2), "mismatch (test 3)"

    print("KERNEL_OK")
</pallas_src>

<mosaic_0001>
module attributes {stable_mosaic.version = 11 : i64} {
  func.func @_ff_kernel(%arg0: i32, %arg1: i32, %arg2: memref<64x128xf32, #tpu.memory_space<vmem>>, %arg3: memref<2x128xf32, #tpu.memory_space<vmem>>, %arg4: memref<128x512xbf16, #tpu.memory_space<vmem>>, %arg5: memref<128x512xbf16, #tpu.memory_space<vmem>>, %arg6: memref<2x512xf32, #tpu.memory_space<vmem>>, %arg7: memref<512x128xbf16, #tpu.memory_space<vmem>>, %arg8: memref<1x128xf32, #tpu.memory_space<vmem>>, %arg9: memref<64x128xf32, #tpu.memory_space<vmem>>, %arg10: memref<64x128xbf16, #tpu.memory_space<vmem>>, %arg11: memref<64x128xf32, #tpu.memory_space<vmem>>) attributes {dimension_semantics = [#tpu.dimension_semantics<parallel>, #tpu.dimension_semantics<arbitrary>], iteration_bounds = array<i64: 2, 1>, scalar_prefetch = 0 : i64, scratch_operands = 2 : i64, tpu.core_type = #tpu.core_type<tc>, window_params = [{transform_indices = @transform_0, window_bounds = array<i64: 64, 128>}, {pipeline_mode = #tpu.pipeline_mode<synchronous>, transform_indices = @transform_1, window_bounds = array<i64: 2, 128>}, {transform_indices = @transform_2, window_bounds = array<i64: 128, 512>}, {transform_indices = @transform_3, window_bounds = array<i64: 128, 512>}, {transform_indices = @transform_4, window_bounds = array<i64: 2, 512>}, {transform_indices = @transform_5, window_bounds = array<i64: 512, 128>}, {pipeline_mode = #tpu.pipeline_mode<synchronous>, transform_indices = @transform_6, window_bounds = array<i64: 1, 128>}, {transform_indices = @transform_7, window_bounds = array<i64: 64, 128>}]} {
    %c0_i32 = arith.constant 0 : i32
    %0 = arith.cmpi eq, %arg1, %c0_i32 : i32
    %1 = arith.extui %0 : i1 to i32
    %c0_i32_0 = arith.constant 0 : i32
    %2 = arith.cmpi ne, %1, %c0_i32_0 : i32
    scf.if %2 {
      %c0_23 = arith.constant 0 : index
      %c0_24 = arith.constant 0 : index
      %37 = vector.load %arg2[%c0_23, %c0_24] : memref<64x128xf32, #tpu.memory_space<vmem>>, vector<64x128xf32>
      %cst_25 = arith.constant dense<0.000000e+00> : vector<64xf32>
      %38 = vector.multi_reduction <add>, %37, %cst_25 [1] : vector<64x128xf32> to vector<64xf32>
      %39 = vector.shape_cast %38 : vector<64xf32> to vector<64x1xf32>
      %cst_26 = arith.constant 1.280000e+02 : f32
      %40 = vector.broadcast %cst_26 : f32 to vector<64x1xf32>
      %41 = arith.divf %39, %40 : vector<64x1xf32>
      %42 = vector.broadcast %41 : vector<64x1xf32> to vector<64x128xf32>
      %43 = arith.subf %37, %42 : vector<64x128xf32>
      %44 = arith.mulf %43, %43 : vector<64x128xf32>
      %cst_27 = arith.constant dense<0.000000e+00> : vector<64xf32>
      %45 = vector.multi_reduction <add>, %44, %cst_27 [1] : vector<64x128xf32> to vector<64xf32>
      %46 = vector.shape_cast %45 : vector<64xf32> to vector<64x1xf32>
      %cst_28 = arith.constant 1.280000e+02 : f32
      %47 = vector.broadcast %cst_28 : f32 to vector<64x1xf32>
      %48 = arith.divf %46, %47 : vector<64x1xf32>
      %49 = vector.broadcast %41 : vector<64x1xf32> to vector<64x128xf32>
      %50 = arith.subf %37, %49 : vector<64x128xf32>
      %cst_29 = arith.constant 9.99999974E-6 : f32
      %51 = vector.broadcast %cst_29 : f32 to vector<64x1xf32>
      %52 = arith.addf %48, %51 : vector<64x1xf32>
      %53 = math.rsqrt %52 : vector<64x1xf32>
      %54 = vector.broadcast %53 : vector<64x1xf32> to vector<64x128xf32>
      %55 = arith.mulf %50, %54 : vector<64x128xf32>
      %c0_30 = arith.constant 0 : index
      %c0_31 = arith.constant 0 : index
      %56 = vector.load %arg3[%c0_30, %c0_31] : memref<2x128xf32, #tpu.memory_space<vmem>>, vector<1x128xf32>
      %57 = vector.broadcast %56 : vector<1x128xf32> to vector<64x128xf32>
      %58 = arith.mulf %55, %57 : vector<64x128xf32>
      %c1_32 = arith.constant 1 : index
      %c0_33 = arith.constant 0 : index
      %59 = vector.load %arg3[%c1_32, %c0_33] : memref<2x128xf32, #tpu.memory_space<vmem>>, vector<1x128xf32>
      %60 = vector.broadcast %59 : vector<1x128xf32> to vector<64x128xf32>
      %61 = arith.addf %58, %60 : vector<64x128xf32>
      %62 = arith.truncf %61 : vector<64x128xf32> to vector<64x128xbf16>
      %c0_34 = arith.constant 0 : index
      %c0_35 = arith.constant 0 : index
      %63 = vector.load %arg10[%c0_34, %c0_35] : memref<64x128xbf16, #tpu.memory_space<vmem>>, vector<64x128xbf16>
      tpu.vector_store %arg10[%c0_34, %c0_35], %62 {strides = array<i32>} : memref<64x128xbf16, #tpu.memory_space<vmem>>, vector<64x128xbf16>,
      %cst_36 = arith.constant 0.000000e+00 : f32
      %64 = vector.broadcast %cst_36 : f32 to vector<64x128xf32>
      %c0_37 = arith.constant 0 : index
      %c0_38 = arith.constant 0 : index
      %65 = vector.load %arg11[%c0_37, %c0_38] : memref<64x128xf32, #tpu.memory_space<vmem>>, vector<64x128xf32>
      tpu.vector_store %arg11[%c0_37, %c0_38], %64 {strides = array<i32>} : memref<64x128xf32, #tpu.memory_space<vmem>>, vector<64x128xf32>,
    } else {
    }
    %c0 = arith.constant 0 : index
    %c0_1 = arith.constant 0 : index
    %3 = vector.load %arg10[%c0, %c0_1] : memref<64x128xbf16, #tpu.memory_space<vmem>>, vector<64x128xbf16>
    %c0_2 = arith.constant 0 : index
    %c0_3 = arith.constant 0 : index
    %4 = vector.load %arg4[%c0_2, %c0_3] : memref<128x512xbf16, #tpu.memory_space<vmem>>, vector<128x512xbf16>
    %cst = arith.constant dense<0.000000e+00> : vector<64x512xf32>
    %5 = tpu.matmul %3, %4, %cst {dimension_numbers = #tpu.dot_dimension_numbers<[1], [0], [0], [1], [0, 0, 1, 1], [], []>} : vector<64x128xbf16>, vector<128x512xbf16>, vector<64x512xf32> -> vector<64x512xf32>
    %c0_4 = arith.constant 0 : index
    %c0_5 = arith.constant 0 : index
    %6 = vector.load %arg6[%c0_4, %c0_5] : memref<2x512xf32, #tpu.memory_space<vmem>>, vector<1x512xf32>
    %7 = vector.broadcast %6 : vector<1x512xf32> to vector<64x512xf32>
    %8 = arith.addf %5, %7 : vector<64x512xf32>
    %c0_6 = arith.constant 0 : index
    %c0_7 = arith.constant 0 : index
    %9 = vector.load %arg5[%c0_6, %c0_7] : memref<128x512xbf16, #tpu.memory_space<vmem>>, vector<128x512xbf16>
    %cst_8 = arith.constant dense<0.000000e+00> : vector<64x512xf32>
    %10 = tpu.matmul %3, %9, %cst_8 {dimension_numbers = #tpu.dot_dimension_numbers<[1], [0], [0], [1], [0, 0, 1, 1], [], []>} : vector<64x128xbf16>, vector<128x512xbf16>, vector<64x512xf32> -> vector<64x512xf32>
    %c1 = arith.constant 1 : index
    %c0_9 = arith.constant 0 : index
    %11 = vector.load %arg6[%c1, %c0_9] : memref<2x512xf32, #tpu.memory_space<vmem>>, vector<1x512xf32>
    %12 = vector.broadcast %11 : vector<1x512xf32> to vector<64x512xf32>
    %13 = arith.addf %10, %12 : vector<64x512xf32>
    %14 = arith.mulf %13, %13 : vector<64x512xf32>
    %15 = arith.mulf %13, %14 : vector<64x512xf32>
    %cst_10 = arith.constant 4.471500e-02 : f32
    %16 = vector.broadcast %cst_10 : f32 to vector<64x512xf32>
    %17 = arith.mulf %16, %15 : vector<64x512xf32>
    %18 = arith.addf %13, %17 : vector<64x512xf32>
    %cst_11 = arith.constant 0.797884583 : f32
    %19 = vector.broadcast %cst_11 : f32 to vector<64x512xf32>
    %20 = arith.mulf %19, %18 : vector<64x512xf32>
    %21 = math.tanh %20 : vector<64x512xf32>
    %cst_12 = arith.constant 1.000000e+00 : f32
    %22 = vector.broadcast %cst_12 : f32 to vector<64x512xf32>
    %23 = arith.addf %22, %21 : vector<64x512xf32>
    %cst_13 = arith.constant 5.000000e-01 : f32
    %24 = vector.broadcast %cst_13 : f32 to vector<64x512xf32>
    %25 = arith.mulf %24, %23 : vector<64x512xf32>
    %26 = arith.mulf %13, %25 : vector<64x512xf32>
    %27 = arith.mulf %8, %26 : vector<64x512xf32>
    %c0_14 = arith.constant 0 : index
    %c0_15 = arith.constant 0 : index
    %28 = vector.load %arg11[%c0_14, %c0_15] : memref<64x128xf32, #tpu.memory_space<vmem>>, vector<64x128xf32>
    %29 = arith.truncf %27 : vector<64x512xf32> to vector<64x512xbf16>
    %c0_16 = arith.constant 0 : index
    %c0_17 = arith.constant 0 : index
    %30 = vector.load %arg7[%c0_16, %c0_17] : memref<512x128xbf16, #tpu.memory_space<vmem>>, vector<512x128xbf16>
    %cst_18 = arith.constant dense<0.000000e+00> : vector<64x128xf32>
    %31 = tpu.matmul %29, %30, %cst_18 {dimension_numbers = #tpu.dot_dimension_numbers<[1], [0], [0], [1], [0, 0, 1, 1], [], []>} : vector<64x512xbf16>, vector<512x128xbf16>, vector<64x128xf32> -> vector<64x128xf32>
    %32 = arith.addf %28, %31 : vector<64x128xf32>
    %c0_19 = arith.constant 0 : index
    %c0_20 = arith.constant 0 : index
    %33 = vector.load %arg11[%c0_19, %c0_20] : memref<64x128xf32, #tpu.memory_space<vmem>>, vector<64x128xf32>
    tpu.vector_store %arg11[%c0_19, %c0_20], %32 {strides = array<i32>} : memref<64x128xf32, #tpu.memory_space<vmem>>, vector<64x128xf32>,
    %c0_i32_21 = arith.constant 0 : i32
    %34 = arith.cmpi eq, %arg1, %c0_i32_21 : i32
    %35 = arith.extui %34 : i1 to i32
    %c0_i32_22 = arith.constant 0 : i32
    %36 = arith.cmpi ne, %35, %c0_i32_22 : i32
    scf.if %36 {
      %c0_23 = arith.constant 0 : index
      %c0_24 = arith.constant 0 : index
      %37 = vector.load %arg11[%c0_23, %c0_24] : memref<64x128xf32, #tpu.memory_space<vmem>>, vector<64x128xf32>
      %c0_25 = arith.constant 0 : index
      %c0_26 = arith.constant 0 : index
      %38 = vector.load %arg8[%c0_25, %c0_26] : memref<1x128xf32, #tpu.memory_space<vmem>>, vector<1x128xf32>
      %39 = vector.broadcast %38 : vector<1x128xf32> to vector<64x128xf32>
      %40 = arith.addf %37, %39 : vector<64x128xf32>
      %c0_27 = arith.constant 0 : index
      %c0_28 = arith.constant 0 : index
      %41 = vector.load %arg9[%c0_27, %c0_28] : memref<64x128xf32, #tpu.memory_space<vmem>>, vector<64x128xf32>
      tpu.vector_store %arg9[%c0_27, %c0_28], %40 {strides = array<i32>} : memref<64x128xf32, #tpu.memory_space<vmem>>, vector<64x128xf32>,
    } else {
    }
    return
  }
  func.func @transform_0(%arg0: i32, %arg1: i32) -> (i32, i32) {
    %c0_i32 = arith.constant 0 : i32
    %c0_i32_0 = arith.constant 0 : i32
    return %arg0, %c0_i32 : i32, i32
  }
  func.func @transform_1(%arg0: i32, %arg1: i32) -> (i32, i32) {
    %c0_i32 = arith.constant 0 : i32
    %c0_i32_0 = arith.constant 0 : i32
    %c0_i32_1 = arith.constant 0 : i32
    return %c0_i32, %c0_i32_0 : i32, i32
  }
  func.func @transform_2(%arg0: i32, %arg1: i32) -> (i32, i32) {
    %c0_i32 = arith.constant 0 : i32
    %c0_i32_0 = arith.constant 0 : i32
    return %c0_i32, %arg1 : i32, i32
  }
  func.func @transform_3(%arg0: i32, %arg1: i32) -> (i32, i32) {
    %c0_i32 = arith.constant 0 : i32
    %c0_i32_0 = arith.constant 0 : i32
    return %c0_i32, %arg1 : i32, i32
  }
  func.func @transform_4(%arg0: i32, %arg1: i32) -> (i32, i32) {
    %c0_i32 = arith.constant 0 : i32
    %c0_i32_0 = arith.constant 0 : i32
    return %c0_i32, %arg1 : i32, i32
  }
  func.func @transform_5(%arg0: i32, %arg1: i32) -> (i32, i32) {
    %c0_i32 = arith.constant 0 : i32
    %c0_i32_0 = arith.constant 0 : i32
    return %arg1, %c0_i32 : i32, i32
  }
  func.func @transform_6(%arg0: i32, %arg1: i32) -> (i32, i32) {
    %c0_i32 = arith.constant 0 : i32
    %c0_i32_0 = arith.constant 0 : i32
    %c0_i32_1 = arith.constant 0 : i32
    return %c0_i32, %c0_i32_0 : i32, i32
  }
  func.func @transform_7(%arg0: i32, %arg1: i32) -> (i32, i32) {
    %c0_i32 = arith.constant 0 : i32
    %c0_i32_0 = arith.constant 0 : i32
    return %arg0, %c0_i32 : i32, i32
  }
}

</mosaic_0001>

<bundles_post_ra>
// kernel: tpu_custom_call.1
= control target key start
LH: loop header
LB: loop body
LE: loop exit
PB: predicated region body
PF: predicated region fallthrough
CT: control target
= control target key end

     0   :  { %s4266_s0 = inlined_call_operand.hbm [shape: f32[128,128], index: 0, kind: input, shape index: {}]   ;;  %s4267_s1 = inlined_call_operand.hbm [shape: f32[2,128], index: 1, kind: input, shape index: {}]   ;;  %s4268_s2 = inlined_call_operand.hbm [shape: bf16[128,512], index: 2, kind: input, shape index: {}]   ;;  %s4269_s3 = inlined_call_operand.hbm [shape: bf16[128,512], index: 3, kind: input, shape index: {}]   ;;  %s4270_s4 = inlined_call_operand.hbm [shape: f32[2,512], index: 4, kind: input, shape index: {}]   ;;  %s4271_s5 = inlined_call_operand.hbm [shape: bf16[512,128], index: 5, kind: input, shape index: {}]   ;;  %s4272_s6 = inlined_call_operand.vmem [shape: f32[1,128], index: 6, kind: input, shape index: {}]   ;;  %s4273_s7 = inlined_call_operand.hbm [shape: f32[128,128], index: 7, kind: output, shape index: {}]  }
   0x1   :  { %4279 = sst [smem:[#allocation39_spill]] %s4267_s1 }
   0x2   :  { %4280 = sst [smem:[#allocation40_spill]] %s4268_s2 }
   0x3   :  { %4281 = sst [smem:[#allocation41_spill]] %s4269_s3 }
   0x4   :  { %4282 = sst [smem:[#allocation42_spill]] %s4270_s4 }
   0x5   :  { %12 = vsyncpa [#allocation5], 0 }
   0x6   :  { %14 = vsyncpa [#allocation5 + $0x1], 0 }
   0x7   :  { %15 = vsyncpa [#allocation8], 0 }
   0x8   :  { %16 = vsyncpa [#allocation11], 0 }
   0x9   :  { %17 = vsyncpa [#allocation14], 0 }
   0xa   :  { %18 = vsyncpa [#allocation6], 0 }
   0xb   :  { %20 = vsyncpa [#allocation6 + $0x1], 0  ;;  %s3323_s24 = smov 0   ;;  %s3325_s25 = smov 0  }
   0xc   :  { %s3327_s26 = smov 0   ;;  %s3329_s27 = smov 0  }
   0xd   :  { %s3331_s28 = smov 0   ;;  %s3333_s29 = smov 0  }
   0xe LB: > { %s4274_s30 = sadd.s32 4294967295, %s3267_s29   ;;  %p2238_p0 = scmp.ge.s32.totalorder %s3267_s29, 1  ;;  %s3267_s29 = sphi %s3333_s29, %s26_s29   ;;  %s3263_s28 = sphi %s3331_s28, %s4339_s28   ;;  %s3259_s27 = sphi %s3329_s27, %s4338_s27   ;;  %s3255_s26 = sphi %s3327_s26, %s4337_s26   ;;  %s3251_s25 = sphi %s3325_s25, %s4336_s25   ;;  %s3247_s24 = sphi %s3323_s24, %s4335_s24  }
   0xf   : > { %p3357_p1 = scmp.eq.s32.totalorder %s4274_s30, 0  ;;  %p241_p2 = scmp.lt.s32.totalorder %s3267_s29, 3 }
  0x10   : > { %s4284_s1 = sld [smem:[#allocation39_spill]]  ;;  %p2244_p4 = scmp.ge.s32.totalorder %s3267_s29, 2 }
  0x11   : > { %p3365_p3 = pnand %p2238_p0, %p241_p2  ;;  %s3269_s13 = smov [#allocation7]  }
  0x12   : > { %s255_s14 = sshll.u32 %s3269_s13, 4  ;;  %s4287_s3 = sld [smem:[#allocation41_spill]]  ;;  %s256_s14 = int_to_ptr.vmem [resolvable:$true] %s255_s14 }
  0x13   : > { %p2810_p5 = pneg %p3365_p3  ;;  %s3270_s19 = smov [#allocation10]  }
  0x14   : > { %s286_s20 = sshll.u32 %s3270_s19, 4  ;;  %s4288_s2 = sld [smem:[#allocation40_spill]]  ;;  %s287_s20 = int_to_ptr.vmem [resolvable:$true] %s286_s20 }
  0x15   : > { %p3374_p6 = pnand %p2810_p5, %p3357_p1  ;;  %s3271_s9 = smov 256  }
  0x16   : > { %s253_s11 = sshll.u32 %s4284_s1, 4  ;;  %s3272_s10 = smov 16   ;;  %s254_s11 = int_to_ptr.hbm [resolvable:$true] %s253_s11 }
  0x17   : > { %2813 = dma.hbm_to_vmem [thread:$0]  (!%p3374_p6), %s254_s11, 32, %s256_s14, [#allocation8]  }
  0x18   : > { %s284_s18 = sshll.u32 %s4287_s3, 4  ;;  %s4289_s4 = sld [smem:[#allocation42_spill]]  ;;  %s285_s18 = int_to_ptr.hbm [resolvable:$true] %s284_s18 }
  0x19   : > { %2819 = dma.hbm_to_vmem [thread:$0]  (!%p3374_p6), %s285_s18, 4096, %s287_s20, [#allocation11], %s3271_s9, %s3271_s9, %s3272_s10  }
  0x1a   : > { %s267_s23 = sshll.u32 %s4288_s2, 4  ;;  %s3273_s30 = smov [#allocation9]   ;;  %s268_s23 = int_to_ptr.hbm [resolvable:$true] %s267_s23 }
  0x1b   : > { %s269_s11 = sshll.u32 %s3273_s30, 4  ;;  %s3274_s14 = smov [#allocation12]   ;;  %s270_s11 = int_to_ptr.vmem [resolvable:$true] %s269_s11 }
  0x1c   : > { %2816 = dma.hbm_to_vmem [thread:$0]  (!%p3374_p6), %s268_s23, 4096, %s270_s11, [#allocation8], %s3271_s9, %s3271_s9, %s3272_s10  }
  0x1d   : > { %s304_s19 = sshll.u32 %s3274_s14, 4  ;;  %s316_s20 = sshll.u32 %s4271_s5, 4  ;;  %s305_s19 = int_to_ptr.vmem [resolvable:$true] %s304_s19  ;;  %s317_s20 = int_to_ptr.hbm [resolvable:$true] %s316_s20 }
  0x1e   : > { %s302_s17 = sshll.u32 %s4289_s4, 4  ;;  %s3275_s30 = smov [#allocation13]   ;;  %s303_s17 = int_to_ptr.hbm [resolvable:$true] %s302_s17 }
  0x1f   : > { %2822 = dma.hbm_to_vmem [thread:$0]  (!%p3374_p6), %s303_s17, 128, %s305_s19, [#allocation11]  }
  0x20   : > { %s318_s22 = sshll.u32 %s3275_s30, 4  ;;  %s3276_s23 = smov 64   ;;  %s319_s22 = int_to_ptr.vmem [resolvable:$true] %s318_s22 }
  0x21   : > { %s3277_s9 = smov 4   ;;  %s2237_s10 = sadd.s32 4294967294, %s3267_s29  }
  0x22   : > { %2825 = dma.hbm_to_vmem [thread:$0]  (!%p3374_p6), %s317_s20, 4096, %s319_s22, [#allocation14], %s3276_s23, %s3276_s23, %s3277_s9  }
  0x23   : > { %s38_s13 = sadd.s32 1, %s3263_s28  ;;  %s45_s16 = sadd.s32 1, %s3255_s26 }
  0x24   : > { %p40_p7 = scmp.ge.s32.totalorder %s38_s13, 2  ;;  %p52_p8 = scmp.ne.s32.totalorder %s3255_s26, %s3251_s25 }
  0x25   : > { %p53_p9 = scmp.eq.s32.totalorder %s3267_s29, 0  ;;  %p58_p10 = scmp.ne.s32.totalorder %s3251_s25, %s3247_s24 }
  0x26   : > { %s4341_s13 = smov (%p40_p7, %s38_s13), 0  ;;  %s4292_s14 = sadd.s32 4294967295, %s3267_s29  }
  0x27   : > { %p3410_p11 = por %p53_p9, %p52_p8  ;;  %p3416_p12 = por %p3357_p1, %p58_p10 }
  0x28   : > { %s42_s11 = ssub.s32 %s3263_s28, %s4341_s13  ;;  %p228_p13 = scmp.eq.s32.totalorder %s4292_s14, 1 }
  0x29   : > { %p43_p0 = scmp.eq.s32.totalorder %s42_s11, 0  ;;  %p234_p2 = scmp.eq.s32.totalorder %s2237_s10, 1 }
  0x2a   : > { %p3424_p5 = por %p228_p13, %p52_p8  ;;  %p2839_p6 = scmp.lt.s32.totalorder %s3267_s29, 2 }
  0x2b   : > { %s3430_s21 = scalar_select %p43_p0, %s3255_s26, %s45_s16  }
  0x2c   : > { %p3432_p7 = por %p234_p2, %p58_p10  ;;  %s335_s20 = sand.u32 1, %s3255_s26  }
  0x2d   : > { %s2245_s30 = sshll.u32 %s335_s20, 6  ;;  %s2661_s22 = sshll.u32 %s3263_s28, 6 }
  0x2e   : > { %s344_s14 = scalar_lea.hbm %s4266_s0, %s2661_s22  ;;  %s339_s11 = scalar_lea.vmem [#allocation4], %s2245_s30 }
  0x2f   : > { %s347_s10 = sshll.u32 %s339_s11, 4  ;;  %s345_s1 = sshll.u32 %s344_s14, 4  ;;  %s348_s10 = int_to_ptr.vmem [resolvable:$true] %s347_s10  ;;  %s346_s1 = int_to_ptr.hbm [resolvable:$true] %s345_s1 }
  0x30   : > { %p2827_p8 = pnand %p2839_p6, %p3410_p11  ;;  %s336_s16 = scalar_lea.sflag [#allocation5], %s335_s20 }
  0x31   : > { %s3278_s2 = smov 128   ;;  %s3279_s3 = smov 8  }
  0x32   : > { %2829 = dma.hbm_to_vmem [thread:$0]  (!%p2827_p8), %s346_s1, 1024, %s348_s10, %s336_s16, %s3278_s2, %s3278_s2, %s3279_s3  }
  0x33   : > { %359 = sbr.rel (%p3365_p3) target bundleno = 878 (0x36e), region = 48 }
  0x38   : > { %s3446_s4 = sand.u32 1, %s3251_s25  }
  0x39   : > { %s2249_s30 = sshll.u32 %s3446_s4, 6  ;;  %s362_s22 = scalar_lea.sflag [#allocation5], %s3446_s4 }
  0x3a   : > { %s3452_s23 = scalar_lea.vmem [#allocation4], %s2249_s30 }
  0x3b   : > { %3226 = dma.done.wait (%p3416_p12), %s362_s22, 1024  }
  0x3c   : > { %3228 = vsyncadd (%p3416_p12), %s362_s22, 4294966272 }
  0x3d   : > { %3230 = dma.done.wait (%p3357_p1), [#allocation8], 4128  }
  0x3e   : > { %3232 = vsyncadd (%p3357_p1), [#allocation8], 4294963168 }
  0x3f   : > { %3234 = dma.done.wait (%p3357_p1), [#allocation11], 4224  }
  0x40   : > { %3236 = vsyncadd (%p3357_p1), [#allocation11], 4294963072 }
  0x41   : > { %3238 = dma.done.wait (%p3357_p1), [#allocation14], 4096  }
  0x42   : > { %3240 = vsyncadd (%p3357_p1), [#allocation14], 4294963200  ;;  %v436_v0 = vld [vmem:[%s3452_s23 + $0x20] sm:$0xff]  ;;  %v434_v1 = vld [vmem:[%s3452_s23 + $0x10] sm:$0xff]  ;;  %v3280_v7 = vmov 128.0   ;;  %s4210_s3 = scalar_lea.vmem [#allocation15], %s2249_s30 }
  0x43   : > { %v432_v2 = vld [vmem:[%s3452_s23] sm:$0xff]  ;;  %448 = vadd.xlane.f32.xlu2 %v436_v0  ;;  %444 = vadd.xlane.f32.xlu1 %v434_v1  ;;  %v437_v3 = vld [vmem:[%s3452_s23 + $0x28] sm:$0xff]  ;;  %v435_v4 = vld [vmem:[%s3452_s23 + $0x18] sm:$0xff]  ;;  %2911 = vrcp.f32 %v3280_v7  ;;  %s2762_s8 = sshll.u32 %s3259_s27, 6  ;;  %s2096_s20 = sshll.u32 %s4210_s3, 4  ;;  %s2097_s20 = int_to_ptr.vmem [resolvable:$true] %s2096_s20 }
  0x44   : > { %440 = vadd.xlane.f32.xlu0 %v432_v2  ;;  %v433_v5 = vld [vmem:[%s3452_s23 + $0x8] sm:$0xff]  ;;  %v438_v6 = vld [vmem:[%s3452_s23 + $0x30] sm:$0xff]  ;;  %v3495_v30 = vld [vmem:[%s3452_s23 + $0x38] sm:$0xff]  ;;  %s2095_s15 = scalar_lea.hbm %s4273_s7, %s2762_s8  ;;  %s2084_s27 = scalar_lea.sflag [#allocation6], %s3446_s4 }
  0x45   : > { %v2386_v43 = vld [vmem:[#allocation9 + $0xe0] sm:$0xf]  ;;  %v2696_v44 = vld [vmem:[#allocation9 + $0xec] sm:$0xf0]  ;;  %v2694_v45 = vld [vmem:[#allocation9 + $0xe4] sm:$0xf] }
  0x46   : > { %v2387_v46 = vor.u32 %v2696_v44, %v2386_v43  ;;  %v2388_v47 = vld [vmem:[#allocation9 + $0xf0] sm:$0xf0]  ;;  %v2394_v48 = vld [vmem:[#allocation9 + $0xe8] sm:$0xf]  ;;  %v2697_v49 = vld [vmem:[#allocation9 + $0xf4] sm:$0xf0] }
  0x47   : > { %v2391_v50 = vor.u32 %v2694_v45, %v2388_v47  ;;  %v2395_v51 = vor.u32 %v2697_v49, %v2394_v48  ;;  %v2695_v52 = vld [vmem:[#allocation9 + $0xec] sm:$0xf]  ;;  %v2396_v53 = vld [vmem:[#allocation9 + $0xf8] sm:$0xf0]  ;;  %v2370_v55 = vld [vmem:[#allocation9 + $0xc0] sm:$0xf] }
  0x48   : > { %885 = vmatpush.bf16.msra.mxu0 %v2387_v46  ;;  %v2399_v54 = vor.u32 %v2695_v52, %v2396_v53  ;;  %v2692_v56 = vld [vmem:[#allocation9 + $0xcc] sm:$0xf0]  ;;  %v2690_v57 = vld [vmem:[#allocation9 + $0xc4] sm:$0xf]  ;;  %v2372_v59 = vld [vmem:[#allocation9 + $0xd0] sm:$0xf0] }
  0x49   : > { %v2912_v8 = vpop.eup %2911  ;;  %914 = vmatpush.bf16.msra.mxu1 %v2391_v50  ;;  %943 = vmatpush.bf16.msra.mxu2 %v2395_v51  ;;  %v2371_v58 = vor.u32 %v2692_v56, %v2370_v55  ;;  %v2378_v60 = vld [vmem:[#allocation9 + $0xc8] sm:$0xf]  ;;  %v2693_v61 = vld [vmem:[#allocation9 + $0xd4] sm:$0xf0]  ;;  %v2375_v62 = vor.u32 %v2690_v57, %v2372_v59  ;;  %v2356_v7 = vld [vmem:[#allocation9 + $0xb0] sm:$0xf0] }
  0x4a   : > { %v457_v9 = vmul.f32 128.0, %v2912_v8  ;;  %vm461_vm0 = vweird.f32 %v2912_v8  ;;  %972 = vmatpush.bf16.msra.mxu3 %v2399_v54  ;;  %v2379_v63 = vor.u32 %v2693_v61, %v2378_v60  ;;  %v2681_v43 = vld [vmem:[#allocation9 + $0x74] sm:$0xf0]  ;;  %v2679_v47 = vld [vmem:[#allocation9 + $0x6c] sm:$0xf]  ;;  %s2098_s9 = sshll.u32 %s2095_s15, 4  ;;  %s2099_s9 = int_to_ptr.hbm [resolvable:$true] %s2098_s9 }
  0x4b   : > { %450 = vadd.xlane.f32.xlu2 %v437_v3  ;;  %446 = vadd.xlane.f32.xlu1 %v435_v4  ;;  %v2332_v48 = vld [vmem:[#allocation9 + $0x78] sm:$0xf0]  ;;  %v2306_v51 = vld [vmem:[#allocation9 + $0x40] sm:$0xf]  ;;  %v2676_v52 = vld [vmem:[#allocation9 + $0x4c] sm:$0xf0] }
  0x4c   : > { %442 = vadd.xlane.f32.xlu0 %v433_v5  ;;  %v458_v10 = vsub.f32 1.0, %v457_v9  ;;  %886 = vmatpush.bf16.msra.mxu0 %v2371_v58  ;;  %v2689_v9 = vld [vmem:[#allocation9 + $0xb4] sm:$0xf0]  ;;  %v2335_v49 = vor.u32 %v2679_v47, %v2332_v48  ;;  %v2307_v53 = vor.u32 %v2676_v52, %v2306_v51  ;;  %v2674_v54 = vld [vmem:[#allocation9 + $0x44] sm:$0xf]  ;;  %s3187_s14 = sshra.s32 %s2099_s9, 4  ;;  %s3188_s14 = int_to_ptr.hbm [resolvable:$true] %s3187_s14 }
  0x4d   : > { %915 = vmatpush.bf16.msra.mxu1 %v2375_v62  ;;  %944 = vmatpush.bf16.msra.mxu2 %v2379_v63  ;;  %v2308_v55 = vld [vmem:[#allocation9 + $0x50] sm:$0xf0]  ;;  %v2314_v56 = vld [vmem:[#allocation9 + $0x48] sm:$0xf]  ;;  %v2677_v58 = vld [vmem:[#allocation9 + $0x54] sm:$0xf0]  ;;  %p3194_p10 = scmp.lt.s32.totalorder %s3188_s14, %s4273_s7 }
  0x4e   : > { %v459_v11 = vmul.f32 %v2912_v8, %v458_v10  ;;  %v2311_v57 = vor.u32 %v2674_v54, %v2308_v55  ;;  %v2675_v59 = vld [vmem:[#allocation9 + $0x4c] sm:$0xf]  ;;  %v2316_v60 = vld [vmem:[#allocation9 + $0x58] sm:$0xf0]  ;;  %v2315_v61 = vor.u32 %v2677_v58, %v2314_v56  ;;  %s3189_s11 = scalar_lea.hbm %s3188_s14, 64  ;;  %s3193_s30 = scalar_lea.hbm %s4273_s7, 128 }
  0x4f   : > { %v2319_v62 = vor.u32 %v2675_v59, %v2316_v60  ;;  %p3190_p1 = scmp.ne.s32.totalorder %s3188_s14, %s3189_s11  ;;  %p3195_p11 = scmp.lt.s32.totalorder %s3193_s30, %s3189_s11 }
  0x50   : > { %v460_v12 = vadd.f32 %v2912_v8, %v459_v11 }
  0x51   : > { %p3191_p3 = pnand %p3190_p1, %p3424_p5  ;;  %p3196_p12 = por %p3195_p11, %p3194_p10 }
  0x52   : > { %v3477_v13 = vsel %vm461_vm0, %v2912_v8, %v460_v12  ;;  %v2362_v8 = vld [vmem:[#allocation9 + $0xa8] sm:$0xf]  ;;  %v2687_v12 = vld [vmem:[#allocation9 + $0xac] sm:$0xf] }
  0x53   : > { %452 = vadd.xlane.f32.xlu2 %v438_v6  ;;  %v2363_v11 = vor.u32 %v2689_v9, %v2362_v8  ;;  %v2298_v8 = vld [vmem:[#allocation9 + $0x28] sm:$0xf]  ;;  %v2673_v9 = vld [vmem:[#allocation9 + $0x34] sm:$0xf0]  ;;  %p3192_p9 = pneg %p3191_p3 }
  0x55   : > { %945 = vmatpush.bf16.msra.mxu2 %v2363_v11  ;;  %p3197_p13 = pnand %p3196_p12, %p3192_p9 }
  0xb6   : > { %v449_v14 = vpop.xlane.xlu2 %448  ;;  %v445_v15 = vpop.xlane.xlu1 %444 }
  0xb7   : > { %v441_v16 = vpop.xlane.xlu0 %440  ;;  %v467_v26 = vmul.f32 %v3477_v13, %v449_v14  ;;  %v465_v27 = vmul.f32 %v3477_v13, %v445_v15  ;;  %v2364_v14 = vld [vmem:[#allocation9 + $0xb8] sm:$0xf0] }
  0xb8   : > { %v463_v17 = vmul.f32 %v3477_v13, %v441_v16  ;;  %v2367_v15 = vor.u32 %v2687_v12, %v2364_v14  ;;  %v2338_v16 = vld [vmem:[#allocation9 + $0x80] sm:$0xf]  ;;  %v2299_v14 = vor.u32 %v2673_v9, %v2298_v8 }
  0xb9   : > { %v3499_v32 = vsub.f32 %v436_v0, %v467_v26  ;;  %v3501_v33 = vsub.f32 %v434_v1, %v465_v27  ;;  %v2691_v0 = vld [vmem:[#allocation9 + $0xcc] sm:$0xf]  ;;  %v2380_v1 = vld [vmem:[#allocation9 + $0xd8] sm:$0xf0] }
  0xba   : > { %v3480_v18 = vsub.f32 %v432_v2, %v463_v17  ;;  %v2383_v2 = vor.u32 %v2691_v0, %v2380_v1  ;;  %v2684_v17 = vld [vmem:[#allocation9 + $0x8c] sm:$0xf0]  ;;  %v2683_v27 = vld [vmem:[#allocation9 + $0x8c] sm:$0xf]  ;;  %v2290_v0 = vld [vmem:[#allocation9 + $0x20] sm:$0xf] }
  0xbb   : > { %v483_v38 = vmul.f32 %v3499_v32, %v3499_v32  ;;  %v481_v39 = vmul.f32 %v3501_v33, %v3501_v33  ;;  %v2672_v1 = vld [vmem:[#allocation9 + $0x2c] sm:$0xf0] }
  0xbc   : > { %v479_v19 = vmul.f32 %v3480_v18, %v3480_v18  ;;  %973 = vmatpush.bf16.msra.mxu3 %v2383_v2  ;;  %v2670_v2 = vld [vmem:[#allocation9 + $0x24] sm:$0xf] }
  0xbe   : > { %487 = vadd.xlane.f32.xlu0 %v479_v19  ;;  %v451_v20 = vpop.xlane.xlu2 %450  ;;  %v447_v21 = vpop.xlane.xlu1 %446  ;;  %v2682_v19 = vld [vmem:[#allocation9 + $0x84] sm:$0xf] }
  0xbf   : > { %v466_v22 = vmul.f32 %v3477_v13, %v447_v21  ;;  %v443_v23 = vpop.xlane.xlu0 %442  ;;  %v468_v37 = vmul.f32 %v3477_v13, %v451_v20  ;;  %v2339_v20 = vor.u32 %v2684_v17, %v2338_v16  ;;  %v2340_v21 = vld [vmem:[#allocation9 + $0x90] sm:$0xf0]  ;;  %v2300_v16 = vld [vmem:[#allocation9 + $0x38] sm:$0xf0] }
  0xc0   : > { %v464_v24 = vmul.f32 %v3477_v13, %v443_v23  ;;  %974 = vmatpush.bf16.msra.mxu3 %v2367_v15  ;;  %v2685_v23 = vld [vmem:[#allocation9 + $0x94] sm:$0xf0]  ;;  %v2671_v15 = vld [vmem:[#allocation9 + $0x2c] sm:$0xf] }
  0xc1   : > { %v3486_v25 = vsub.f32 %v435_v4, %v466_v22  ;;  %v3514_v41 = vsub.f32 %v437_v3, %v468_v37  ;;  %v2354_v3 = vld [vmem:[#allocation9 + $0xa0] sm:$0xf]  ;;  %v2688_v4 = vld [vmem:[#allocation9 + $0xac] sm:$0xf0]  ;;  %v2346_v22 = vld [vmem:[#allocation9 + $0x88] sm:$0xf] }
  0xc2   : > { %v3490_v28 = vsub.f32 %v433_v5, %v464_v24  ;;  %v2686_v5 = vld [vmem:[#allocation9 + $0xa4] sm:$0xf]  ;;  %v2343_v24 = vor.u32 %v2682_v19, %v2340_v21  ;;  %v2347_v26 = vor.u32 %v2685_v23, %v2346_v22  ;;  %v2303_v19 = vor.u32 %v2671_v15, %v2300_v16  ;;  %v2274_v23 = vld [vmem:[#allocation9] sm:$0xf] }
  0xc3   : > { %v482_v29 = vmul.f32 %v3486_v25, %v3486_v25  ;;  %v484_v42 = vmul.f32 %v3514_v41, %v3514_v41  ;;  %v2359_v10 = vor.u32 %v2686_v5, %v2356_v7  ;;  %v2678_v37 = vld [vmem:[#allocation9 + $0x64] sm:$0xf]  ;;  %v2292_v7 = vld [vmem:[#allocation9 + $0x30] sm:$0xf0] }
  0xc4   : > { %v480_v31 = vmul.f32 %v3490_v28, %v3490_v28  ;;  %946 = vmatpush.bf16.msra.mxu2 %v2347_v26  ;;  %v2295_v12 = vor.u32 %v2670_v2, %v2292_v7  ;;  %v3539_v2 = vld [vmem:[#allocation7] ss:$0 sm:$0xff] }
  0xc5   : > { %493 = vadd.xlane.f32.xlu2 %v482_v29  ;;  %916 = vmatpush.bf16.msra.mxu1 %v2359_v10  ;;  %v2348_v29 = vld [vmem:[#allocation9 + $0x98] sm:$0xf0] }
  0xc6   : > { %454 = vadd.xlane.f32.xlu0 %v3495_v30  ;;  %489 = vadd.xlane.f32.xlu1 %v480_v31  ;;  %v453_v34 = vpop.xlane.xlu2 %452  ;;  %v2351_v31 = vor.u32 %v2683_v27, %v2348_v29  ;;  %v2666_v27 = vld [vmem:[#allocation9 + $0x4] sm:$0xf]  ;;  %v2276_v29 = vld [vmem:[#allocation9 + $0x10] sm:$0xf0] }
  0xc7   : > { %v469_v35 = vmul.f32 %v3477_v13, %v453_v34  ;;  %v2322_v34 = vld [vmem:[#allocation9 + $0x60] sm:$0xf] }
  0xc8   : > { %975 = vmatpush.bf16.msra.mxu3 %v2351_v31  ;;  %v2282_v31 = vld [vmem:[#allocation9 + $0x8] sm:$0xf] }
  0xc9   : > { %v3505_v36 = vsub.f32 %v438_v6, %v469_v35  ;;  %v2355_v6 = vor.u32 %v2688_v4, %v2354_v3  ;;  %917 = vmatpush.bf16.msra.mxu1 %v2343_v24  ;;  %v2680_v35 = vld [vmem:[#allocation9 + $0x6c] sm:$0xf0] }
  0xca   : > { %v2668_v24 = vld [vmem:[#allocation9 + $0xc] sm:$0xf0] }
  0xcb   : > { %v485_v40 = vmul.f32 %v3505_v36, %v3505_v36  ;;  %887 = vmatpush.bf16.msra.mxu0 %v2355_v6  ;;  %v2291_v6 = vor.u32 %v2672_v1, %v2290_v0 }
  0xcc   : > { %976 = vmatpush.bf16.msra.mxu3 %v2335_v49 }
  0xcd   : > { %499 = vadd.xlane.f32.xlu2 %v485_v40  ;;  %v2324_v40 = vld [vmem:[#allocation9 + $0x70] sm:$0xf0] }
  0xce   : > { %495 = vadd.xlane.f32.xlu0 %v483_v38  ;;  %491 = vadd.xlane.f32.xlu1 %v481_v39  ;;  %v2323_v39 = vor.u32 %v2680_v35, %v2322_v34  ;;  %v2327_v45 = vor.u32 %v2678_v37, %v2324_v40  ;;  %v2275_v35 = vor.u32 %v2668_v24, %v2274_v23  ;;  %v2669_v37 = vld [vmem:[#allocation9 + $0x14] sm:$0xf0] }
  0xcf   : > { %888 = vmatpush.bf16.msra.mxu0 %v2339_v20  ;;  %v2283_v40 = vor.u32 %v2669_v37, %v2282_v31 }
  0xd0   : > { %918 = vmatpush.bf16.msra.mxu1 %v2327_v45  ;;  %977 = vmatpush.bf16.msra.mxu3 %v2319_v62 }
  0xd3   : > { %889 = vmatpush.bf16.msra.mxu0 %v2323_v39  ;;  %v2279_v39 = vor.u32 %v2666_v27, %v2276_v29 }
  0xd4   : > { %919 = vmatpush.bf16.msra.mxu1 %v2311_v57  ;;  %978 = vmatpush.bf16.msra.mxu3 %v2303_v19 }
  0xd6   : > { %497 = vadd.xlane.f32.xlu1 %v484_v42  ;;  %v2330_v42 = vld [vmem:[#allocation9 + $0x68] sm:$0xf] }
  0xd7   : > { %v2331_v46 = vor.u32 %v2681_v43, %v2330_v42  ;;  %890 = vmatpush.bf16.msra.mxu0 %v2307_v53  ;;  %v2284_v42 = vld [vmem:[#allocation9 + $0x18] sm:$0xf0] }
  0xd8   : > { %920 = vmatpush.bf16.msra.mxu1 %v2295_v12  ;;  %v3547_v12 = vld [vmem:[#allocation7 + $0x1] ss:$0 sm:$0xff] }
  0xd9   : > { %947 = vmatpush.bf16.msra.mxu2 %v2331_v46 }
  0xdb   : > { %891 = vmatpush.bf16.msra.mxu0 %v2291_v6 }
  0xdc   : > { %921 = vmatpush.bf16.msra.mxu1 %v2279_v39 }
  0xdd   : > { %948 = vmatpush.bf16.msra.mxu2 %v2315_v61 }
  0xdf   : > { %892 = vmatpush.bf16.msra.mxu0 %v2275_v35 }
  0xe1   : > { %949 = vmatpush.bf16.msra.mxu2 %v2299_v14 }
  0xe5   : > { %950 = vmatpush.bf16.msra.mxu2 %v2283_v40 }
 0x131   : > { %v488_v38 = vpop.xlane.xlu0 %487 }
 0x132   : > { %v503_v44 = vmul.f32 %v488_v38, %v3477_v13 }
 0x134   : > { %v3519_v50 = vadd.f32 1e-05, %v503_v44 }
 0x136   : > { %2913 = vrsqrt.f32 %v3519_v50  ;;  %vm525_vm2 = vweird.f32 %v3519_v50 }
 0x138   : > { %v494_v63 = vpop.xlane.xlu2 %493 }
 0x139   : > { %v506_v3 = vmul.f32 %v494_v63, %v3477_v13  ;;  %v490_v4 = vpop.xlane.xlu1 %489  ;;  %v455_v5 = vpop.xlane.xlu0 %454 }
 0x13a   : > { %v504_v10 = vmul.f32 %v490_v4, %v3477_v13  ;;  %v470_v11 = vmul.f32 %v3477_v13, %v455_v5 }
 0x13b   : > { %v3525_v17 = vadd.f32 1e-05, %v506_v3 }
 0x13c   : > { %v2914_v20 = vpop.eup %2913  ;;  %v512_v21 = vadd.f32 1e-05, %v504_v10  ;;  %v3528_v22 = vsub.f32 %v3495_v30, %v470_v11  ;;  %v2667_v30 = vld [vmem:[#allocation9 + $0xc] sm:$0xf]  ;;  %v2516_v10 = vld [vmem:[#allocation10 + $0xf0] sm:$0xf0] }
 0x13d   : > { %v520_v26 = vmul.f32 %v2914_v20, %v3519_v50  ;;  %2915 = vrsqrt.f32 %v3525_v17  ;;  %v2287_v43 = vor.u32 %v2667_v30, %v2284_v42  ;;  %vm526_vm1 = vweird.f32 %v2914_v20 }
 0x13e   : > { %2917 = vrsqrt.f32 %v512_v21  ;;  %v486_v34 = vmul.f32 %v3528_v22, %v3528_v22  ;;  %vm527_vm3 = vmor %vm525_vm2, %vm526_vm1  ;;  %vm535_vm4 = vweird.f32 %v512_v21  ;;  %vm555_vm6 = vweird.f32 %v3525_v17 }
 0x13f   : > { %v521_v38 = vmul.f32 %v2914_v20, %v520_v26  ;;  %979 = vmatpush.bf16.msra.mxu3 %v2287_v43 }
 0x140   : > { %501 = vadd.xlane.f32.xlu0 %v486_v34 }
 0x141   : > { %v522_v44 = vmul.f32 0.5, %v521_v38  ;;  %v492_v45 = vpop.xlane.xlu1 %491  ;;  %v496_v46 = vpop.xlane.xlu0 %495 }
 0x142   : > { %v505_v47 = vmul.f32 %v492_v45, %v3477_v13  ;;  %v507_v48 = vmul.f32 %v496_v46, %v3477_v13 }
 0x143   : > { %v2916_v49 = vpop.eup %2915  ;;  %v523_v51 = vsub.f32 1.5, %v522_v44 }
 0x144   : > { %v2918_v52 = vpop.eup %2917  ;;  %v550_v53 = vmul.f32 %v2916_v49, %v3525_v17  ;;  %v513_v54 = vadd.f32 1e-05, %v505_v47  ;;  %v515_v55 = vadd.f32 1e-05, %v507_v48  ;;  %vm556_vm7 = vweird.f32 %v2916_v49 }
 0x145   : > { %v524_v56 = vmul.f32 %v2914_v20, %v523_v51  ;;  %v530_v57 = vmul.f32 %v2918_v52, %v512_v21  ;;  %vm536_vm5 = vweird.f32 %v2918_v52  ;;  %vm3543_vm9 = vmor %vm555_vm6, %vm556_vm7 }
 0x146   : > { %v551_v58 = vmul.f32 %v2916_v49, %v550_v53  ;;  %2919 = vrsqrt.f32 %v513_v54  ;;  %vm537_vm8 = vmor %vm535_vm4, %vm536_vm5  ;;  %vm545_vm10 = vweird.f32 %v513_v54  ;;  %vm565_vm12 = vweird.f32 %v515_v55 }
 0x147   : > { %v531_v59 = vmul.f32 %v2918_v52, %v530_v57  ;;  %2921 = vrsqrt.f32 %v515_v55  ;;  %v528_v60 = vsel %vm527_vm3, %v2914_v20, %v524_v56  ;;  %v2727_v56 = vld [vmem:[#allocation10 + $0xec] sm:$0xf] }
 0x148   : > { %v552_v61 = vmul.f32 0.5, %v551_v58  ;;  %v599_v3 = vmul.f32 %v528_v60, %v3480_v18 }
 0x149   : > { %v532_v62 = vmul.f32 0.5, %v531_v59  ;;  %v498_v63 = vpop.xlane.xlu1 %497  ;;  %v2524_v59 = vld [vmem:[#allocation10 + $0xf8] sm:$0xf0] }
 0x14a   : > { %v553_v0 = vsub.f32 1.5, %v552_v61  ;;  %v508_v1 = vmul.f32 %v498_v63, %v3477_v13  ;;  %v609_v18 = vmul.f32 %v3539_v2, %v599_v3  ;;  %v2527_v60 = vor.u32 %v2727_v56, %v2524_v59  ;;  %v2466_v56 = vld [vmem:[#allocation10 + $0x80] sm:$0xf]  ;;  %v2468_v59 = vld [vmem:[#allocation10 + $0x90] sm:$0xf0] }
 0x14b   : > { %v533_v50 = vsub.f32 1.5, %v532_v62 }
 0x14c   : > { %v2920_v4 = vpop.eup %2919  ;;  %v554_v6 = vmul.f32 %v2916_v49, %v553_v0  ;;  %v516_v9 = vadd.f32 1e-05, %v508_v1  ;;  %v619_v24 = vadd.f32 %v3547_v12, %v609_v18  ;;  %1291 = vmatpush.bf16.msrb.mxu3 %v2527_v60  ;;  %v500_v1 = vpop.xlane.xlu2 %499  ;;  %v2711_v60 = vld [vmem:[#allocation10 + $0x6c] sm:$0xf] }
 0x14d   : > { %v2922_v5 = vpop.eup %2921  ;;  %v534_v7 = vmul.f32 %v2918_v52, %v533_v50  ;;  %v540_v8 = vmul.f32 %v2920_v4, %v513_v54  ;;  %vm546_vm11 = vweird.f32 %v2920_v4  ;;  %v509_v3 = vmul.f32 %v500_v1, %v3477_v13  ;;  %v2442_v1 = vld [vmem:[#allocation10 + $0x48] sm:$0xf] }
 0x14e   : > { %v560_v11 = vmul.f32 %v2922_v5, %v515_v55  ;;  %2923 = vrsqrt.f32 %v516_v9  ;;  %v558_v19 = vsel %vm3543_vm9, %v2916_v49, %v554_v6  ;;  %vm547_vm13 = vmor %vm545_vm10, %vm546_vm11  ;;  %vm566_vm14 = vweird.f32 %v2922_v5  ;;  %v2729_v55 = vld [vmem:[#allocation10 + $0xf4] sm:$0xf0]  ;;  %v2514_v6 = vld [vmem:[#allocation10 + $0xe0] sm:$0xf] }
 0x14f   : > { %v538_v14 = vsel %vm537_vm8, %v2918_v52, %v534_v7  ;;  %v541_v15 = vmul.f32 %v2920_v4, %v540_v8  ;;  %v602_v27 = vmul.f32 %v558_v19, %v3486_v25  ;;  %vm567_vm15 = vmor %vm565_vm12, %vm566_vm14  ;;  %vm575_vm0 = vweird.f32 %v516_v9  ;;  %v2728_v7 = vld [vmem:[#allocation10 + $0xec] sm:$0xf0]  ;;  %v2726_v8 = vld [vmem:[#allocation10 + $0xe4] sm:$0xf] }
 0x150   : > { %v600_v16 = vmul.f32 %v538_v14, %v3490_v28  ;;  %v561_v17 = vmul.f32 %v2922_v5, %v560_v11  ;;  %v3587_v50 = vadd.f32 1e-05, %v509_v3  ;;  %v2519_v11 = vor.u32 %v2726_v8, %v2516_v10  ;;  %v2506_v14 = vld [vmem:[#allocation10 + $0xc8] sm:$0xf]  ;;  %v2508_v19 = vld [vmem:[#allocation10 + $0xd8] sm:$0xf0] }
 0x151   : > { %v542_v20 = vmul.f32 0.5, %v541_v15  ;;  %v612_v39 = vmul.f32 %v3539_v2, %v602_v27  ;;  %v2725_v15 = vld [vmem:[#allocation10 + $0xd4] sm:$0xf0]  ;;  %v2500_v27 = vld [vmem:[#allocation10 + $0xd0] sm:$0xf0] }
 0x152   : > { %v610_v21 = vmul.f32 %v3539_v2, %v600_v16  ;;  %v562_v23 = vmul.f32 0.5, %v561_v17  ;;  %2925 = vrsqrt.f32 %v3587_v50  ;;  %1233 = vmatpush.bf16.msrb.mxu1 %v2519_v11  ;;  %v2723_v16 = vld [vmem:[#allocation10 + $0xcc] sm:$0xf]  ;;  %v2507_v17 = vor.u32 %v2725_v15, %v2506_v14  ;;  %v2709_v3 = vld [vmem:[#allocation10 + $0x54] sm:$0xf0] }
 0x153   : > { %v543_v26 = vsub.f32 1.5, %v542_v20  ;;  %v622_v45 = vadd.f32 %v3547_v12, %v612_v39  ;;  %v2498_v20 = vld [vmem:[#allocation10 + $0xc0] sm:$0xf]  ;;  %v2474_v39 = vld [vmem:[#allocation10 + $0x88] sm:$0xf]  ;;  %vm585_vm3 = vweird.f32 %v3587_v50 }
 0x154   : > { %v620_v29 = vadd.f32 %v3547_v12, %v610_v21  ;;  %v563_v28 = vsub.f32 1.5, %v562_v23  ;;  %v2924_v31 = vpop.eup %2923  ;;  %v2724_v21 = vld [vmem:[#allocation10 + $0xcc] sm:$0xf0]  ;;  %v2511_v23 = vor.u32 %v2723_v16, %v2508_v19  ;;  %v2710_v8 = vld [vmem:[#allocation10 + $0x64] sm:$0xf] }
 0x155   : > { %v544_v34 = vmul.f32 %v2920_v4, %v543_v26  ;;  %v570_v30 = vmul.f32 %v2924_v31, %v516_v9  ;;  %vm576_vm1 = vweird.f32 %v2924_v31  ;;  %v2515_v9 = vor.u32 %v2728_v7, %v2514_v6  ;;  %v2722_v26 = vld [vmem:[#allocation10 + $0xc4] sm:$0xf]  ;;  %v2712_v7 = vld [vmem:[#allocation10 + $0x6c] sm:$0xf0]  ;;  %v2444_v14 = vld [vmem:[#allocation10 + $0x58] sm:$0xf0] }
 0x156   : > { %v2766_v35 = vpack.c.bf16 %v620_v29, %v619_v24  ;;  %v564_v37 = vmul.f32 %v2922_v5, %v563_v28  ;;  %vm577_vm2 = vmor %vm575_vm0, %vm576_vm1  ;;  %v2499_v24 = vor.u32 %v2724_v21, %v2498_v20  ;;  %v2503_v28 = vor.u32 %v2722_v26, %v2500_v27  ;;  %1292 = vmatpush.bf16.msrb.mxu3 %v2511_v23  ;;  %v2434_v16 = vld [vmem:[#allocation10 + $0x40] sm:$0xf]  ;;  %v2708_v19 = vld [vmem:[#allocation10 + $0x4c] sm:$0xf0] }
 0x157   : > { %v548_v38 = vsel %vm547_vm13, %v2920_v4, %v544_v34  ;;  %v571_v42 = vmul.f32 %v2924_v31, %v570_v30  ;;  %1204 = vmatpush.bf16.msrb.mxu0 %v2515_v9  ;;  %v2721_v34 = vld [vmem:[#allocation10 + $0xb4] sm:$0xf0]  ;;  %v2452_v9 = vld [vmem:[#allocation10 + $0x70] sm:$0xf0]  ;;  %v2706_v20 = vld [vmem:[#allocation10 + $0x44] sm:$0xf] }
 0x158   : > { %2767 = vst [vmem:[#allocation2 + $0x10] sm:$0xff] %v2766_v35   ;;  %v601_v40 = vmul.f32 %v548_v38, %v3501_v33  ;;  %v568_v43 = vsel %vm567_vm15, %v2922_v5, %v564_v37  ;;  %v3590_v4 = vpop.eup %2925  ;;  %v2719_v35 = vld [vmem:[#allocation10 + $0xac] sm:$0xf]  ;;  %1234 = vmatpush.bf16.msrb.mxu1 %v2503_v28  ;;  %v2492_v38 = vld [vmem:[#allocation10 + $0xb8] sm:$0xf0]  ;;  %v2455_v15 = vor.u32 %v2710_v8, %v2452_v9 }
 0x159   : > { %v572_v44 = vmul.f32 0.5, %v571_v42  ;;  %v603_v48 = vmul.f32 %v568_v43, %v3499_v32  ;;  %v2522_v32 = vld [vmem:[#allocation10 + $0xe8] sm:$0xf]  ;;  %v580_v5 = vmul.f32 %v3590_v4, %v3587_v50  ;;  %v2482_v43 = vld [vmem:[#allocation10 + $0xa0] sm:$0xf]  ;;  %vm586_vm4 = vweird.f32 %v3590_v4 }
 0x15a   : > { %v611_v25 = vmul.f32 %v3539_v2, %v601_v40  ;;  %v2523_v58 = vor.u32 %v2729_v55, %v2522_v32  ;;  %v2717_v40 = vld [vmem:[#allocation10 + $0x94] sm:$0xf0]  ;;  %v2458_v32 = vld [vmem:[#allocation10 + $0x68] sm:$0xf]  ;;  %v2436_v21 = vld [vmem:[#allocation10 + $0x50] sm:$0xf0] }
 0x15b   : > { %v573_v47 = vsub.f32 1.5, %v572_v44  ;;  %v613_v53 = vmul.f32 %v3539_v2, %v603_v48  ;;  %v581_v18 = vmul.f32 %v3590_v4, %v580_v5  ;;  %1205 = vmatpush.bf16.msrb.mxu0 %v2499_v24  ;;  %v2720_v44 = vld [vmem:[#allocation10 + $0xac] sm:$0xf0]  ;;  %v2484_v48 = vld [vmem:[#allocation10 + $0xb0] sm:$0xf0]  ;;  %vm3610_vm5 = vmor %vm585_vm3, %vm586_vm4 }
 0x15c   : > { %v621_v46 = vadd.f32 %v3547_v12, %v611_v25  ;;  %1262 = vmatpush.bf16.msrb.mxu2 %v2523_v58  ;;  %v2495_v25 = vor.u32 %v2719_v35, %v2492_v38  ;;  %v2713_v55 = vld [vmem:[#allocation10 + $0x74] sm:$0xf0]  ;;  %v2450_v5 = vld [vmem:[#allocation10 + $0x60] sm:$0xf]  ;;  %v2426_v26 = vld [vmem:[#allocation10 + $0x28] sm:$0xf] }
 0x15d   : > { %v574_v51 = vmul.f32 %v2924_v31, %v573_v47  ;;  %v623_v61 = vadd.f32 %v3547_v12, %v613_v53  ;;  %v3595_v29 = vmul.f32 0.5, %v581_v18  ;;  %v2483_v47 = vor.u32 %v2720_v44, %v2482_v43  ;;  %v2707_v18 = vld [vmem:[#allocation10 + $0x4c] sm:$0xf]  ;;  %v2705_v27 = vld [vmem:[#allocation10 + $0x34] sm:$0xf0] }
 0x15e   : > { %v2771_v49 = vpack.c.bf16 %v622_v45, %v621_v46  ;;  %v2718_v45 = vld [vmem:[#allocation10 + $0xa4] sm:$0xf]  ;;  %v2475_v46 = vor.u32 %v2717_v40, %v2474_v39  ;;  %1293 = vmatpush.bf16.msrb.mxu3 %v2495_v25  ;;  %v2451_v11 = vor.u32 %v2712_v7, %v2450_v5  ;;  %v2447_v24 = vor.u32 %v2707_v18, %v2444_v14  ;;  %v2428_v35 = vld [vmem:[#allocation10 + $0x38] sm:$0xf0]  ;;  %v2410_v40 = vld [vmem:[#allocation10 + $0x8] sm:$0xf] }
 0x15f   : > { %v3563_v52 = vld [vmem:[#allocation2 + $0x10] sm:$0xff]  ;;  %v578_v33 = vsel %vm577_vm2, %v2924_v31, %v574_v51  ;;  %v2490_v31 = vld [vmem:[#allocation10 + $0xa8] sm:$0xf]  ;;  %v2476_v51 = vld [vmem:[#allocation10 + $0x98] sm:$0xf0]  ;;  %v2487_v53 = vor.u32 %v2718_v45, %v2484_v48  ;;  %1206 = vmatpush.bf16.msrb.mxu0 %v2483_v47  ;;  %v583_v10 = vsub.f32 1.5, %v3595_v29  ;;  %v2427_v39 = vor.u32 %v2705_v27, %v2426_v26 }
 0x160   : > { %2783 = vst [vmem:[#allocation2] sm:$0xff] %v2771_v49   ;;  %v604_v54 = vmul.f32 %v578_v33, %v3514_v41  ;;  %893 = vmatmul.bf16.vlgmr.msra.gmra.mxu0 %v3563_v52  ;;  %922 = vmatmul.bf16.vlgmr.msra.gmra.mxu1 %v3563_v52  ;;  %v2491_v30 = vor.u32 %v2721_v34, %v2490_v31  ;;  %v2715_v49 = vld [vmem:[#allocation10 + $0x8c] sm:$0xf]  ;;  %v2418_v43 = vld [vmem:[#allocation10 + $0x20] sm:$0xf]  ;;  %v2744_v26 = vld [vmem:[#allocation13 + $0x70] sm:$0xff] }
 0x161   : > { %951 = vmatmul.bf16.vlgmr.msra.gmra.mxu2 %v3563_v52  ;;  %980 = vmatmul.bf16.vlgmr.msra.gmra.mxu3 %v3563_v52  ;;  %v584_v29 = vmul.f32 %v3590_v4, %v583_v10  ;;  %v2435_v31 = vor.u32 %v2708_v19, %v2434_v16  ;;  %v2703_v34 = vld [vmem:[#allocation10 + $0x2c] sm:$0xf]  ;;  %v2704_v44 = vld [vmem:[#allocation10 + $0x2c] sm:$0xf0]  ;;  %v2702_v45 = vld [vmem:[#allocation10 + $0x24] sm:$0xf] }
 0x162   : > { %v614_v57 = vmul.f32 %v3539_v2, %v604_v54  ;;  %1263 = vmatpush.bf16.msrb.mxu2 %v2507_v17  ;;  %v2479_v54 = vor.u32 %v2715_v49, %v2476_v51  ;;  %1235 = vmatpush.bf16.msrb.mxu1 %v2487_v53  ;;  %v2443_v17 = vor.u32 %v2709_v3, %v2442_v1  ;;  %v2420_v48 = vld [vmem:[#allocation10 + $0x30] sm:$0xf0]  ;;  %v2737_v16 = vld [vmem:[#allocation13 + $0x38] sm:$0xff]  ;;  %v2752_v19 = vld [vmem:[#allocation13 + $0xb0] sm:$0xff] }
 0x163   : > { %v2431_v25 = vor.u32 %v2703_v34, %v2428_v35  ;;  %v588_v50 = vsel %vm3610_vm5, %v3590_v4, %v584_v29  ;;  %v2419_v47 = vor.u32 %v2704_v44, %v2418_v43  ;;  %v2423_v49 = vor.u32 %v2702_v45, %v2420_v48  ;;  %v2751_v27 = vld [vmem:[#allocation13 + $0xa8] sm:$0xff] }
 0x164   : > { %v624_v41 = vadd.f32 %v3547_v12, %v614_v57  ;;  %v2714_v57 = vld [vmem:[#allocation10 + $0x84] sm:$0xf]  ;;  %1294 = vmatpush.bf16.msrb.mxu3 %v2479_v54  ;;  %v605_v54 = vmul.f32 %v588_v50, %v3505_v36  ;;  %v2759_v35 = vld [vmem:[#allocation13 + $0xe8] sm:$0xff]  ;;  %v2734_v50 = vld [vmem:[#allocation13 + $0x20] sm:$0xff] }
 0x166   : > { %v2776_v62 = vpack.c.bf16 %v624_v41, %v623_v61  ;;  %1264 = vmatpush.bf16.msrb.mxu2 %v2491_v30  ;;  %v2460_v61 = vld [vmem:[#allocation10 + $0x78] sm:$0xf0]  ;;  %v2459_v41 = vor.u32 %v2713_v55, %v2458_v32  ;;  %v2439_v30 = vor.u32 %v2706_v20, %v2436_v21  ;;  %v2699_v32 = vld [vmem:[#allocation10 + $0xc] sm:$0xf]  ;;  %v615_v36 = vmul.f32 %v3539_v2, %v605_v54 }
 0x167   : > { %v3574_v63 = vld [vmem:[#allocation2] sm:$0xff]  ;;  %v2463_v6 = vor.u32 %v2711_v60, %v2460_v61 }
 0x168   : > { %2784 = vst [vmem:[#allocation2 + $0x18] sm:$0xff] %v2776_v62   ;;  %v2471_v62 = vor.u32 %v2714_v57, %v2468_v59  ;;  %v2412_v55 = vld [vmem:[#allocation10 + $0x18] sm:$0xf0]  ;;  %v2700_v57 = vld [vmem:[#allocation10 + $0xc] sm:$0xf0]  ;;  %v625_v1 = vadd.f32 %v3547_v12, %v615_v36  ;;  %v2757_v36 = vld [vmem:[#allocation13 + $0xd8] sm:$0xff] }
 0x169   : > { %1295 = vmatpush.bf16.msrb.mxu3 %v2463_v6  ;;  %v2415_v4 = vor.u32 %v2699_v32, %v2412_v55  ;;  %v2404_v59 = vld [vmem:[#allocation10 + $0x10] sm:$0xf0]  ;;  %v2750_v32 = vld [vmem:[#allocation13 + $0xa0] sm:$0xff]  ;;  %v691_v55 = vld [vmem:[#allocation12] ss:$2 sm:$0xf] }
 0x16a   : > { %1265 = vmatpush.bf16.msrb.mxu2 %v2475_v46  ;;  %1236 = vmatpush.bf16.msrb.mxu1 %v2471_v62 }
 0x16d   : > { %1296 = vmatpush.bf16.msrb.mxu3 %v2447_v24  ;;  %v2736_v24 = vld [vmem:[#allocation13 + $0x30] sm:$0xff] }
 0x16e   : > { %1266 = vmatpush.bf16.msrb.mxu2 %v2459_v41  ;;  %1237 = vmatpush.bf16.msrb.mxu1 %v2455_v15 }
 0x16f   : > { %v3580_v0 = vld [vmem:[#allocation2 + $0x18] sm:$0xff] }
 0x170   : > { %898 = vmatmul.bf16.gmra.mxu0 %v3574_v63  ;;  %927 = vmatmul.bf16.gmra.mxu1 %v3574_v63 }
 0x171   : > { %956 = vmatmul.bf16.gmra.mxu2 %v3574_v63  ;;  %985 = vmatmul.bf16.gmra.mxu3 %v3574_v63 }
 0x172   : > { %1267 = vmatpush.bf16.msrb.mxu2 %v2443_v17  ;;  %1238 = vmatpush.bf16.msrb.mxu1 %v2439_v30  ;;  %v2745_v17 = vld [vmem:[#allocation13 + $0x78] sm:$0xff] }
 0x173   : > { %1297 = vmatpush.bf16.msrb.mxu3 %v2431_v25 }
 0x176   : > { %1268 = vmatpush.bf16.msrb.mxu2 %v2427_v39  ;;  %1239 = vmatpush.bf16.msrb.mxu1 %v2423_v49  ;;  %v2733_v49 = vld [vmem:[#allocation13 + $0x18] sm:$0xff] }
 0x177   : > { %1298 = vmatpush.bf16.msrb.mxu3 %v2415_v4  ;;  %v3697_v4 = vperm.slane %v691_v55, 0 }
 0x180   : > { %903 = vmatmul.bf16.gmra.mxu0 %v3580_v0  ;;  %932 = vmatmul.bf16.gmra.mxu1 %v3580_v0 }
 0x181   : > { %961 = vmatmul.bf16.gmra.mxu2 %v3580_v0  ;;  %990 = vmatmul.bf16.gmra.mxu3 %v3580_v0 }
 0x1b3   : > { %v502_v37 = vpop.xlane.xlu0 %501 }
 0x1b4   : > { %v510_v42 = vmul.f32 %v502_v37, %v3477_v13  ;;  %v2716_v13 = vld [vmem:[#allocation10 + $0x8c] sm:$0xf0] }
 0x1b5   : > { %v2467_v58 = vor.u32 %v2716_v13, %v2466_v56  ;;  %v2402_v56 = vld [vmem:[#allocation10] sm:$0xf] }
 0x1b6   : > { %v3598_v33 = vadd.f32 1e-05, %v510_v42  ;;  %v2701_v42 = vld [vmem:[#allocation10 + $0x14] sm:$0xf0]  ;;  %v2403_v60 = vor.u32 %v2700_v57, %v2402_v56  ;;  %v2758_v56 = vld [vmem:[#allocation13 + $0xe0] sm:$0xff]  ;;  %v3699_v57 = vperm.slane %v691_v55, 1 }
 0x1b7   : > { %1207 = vmatpush.bf16.msrb.mxu0 %v2467_v58  ;;  %v2411_v53 = vor.u32 %v2701_v42, %v2410_v40  ;;  %v2698_v58 = vld [vmem:[#allocation10 + $0x4] sm:$0xf]  ;;  %v2735_v40 = vld [vmem:[#allocation13 + $0x28] sm:$0xff] }
 0x1b8   : > { %2927 = vrsqrt.f32 %v3598_v33  ;;  %vm595_vm7 = vweird.f32 %v3598_v33  ;;  %v2407_v61 = vor.u32 %v2698_v58, %v2404_v59  ;;  %v2743_v42 = vld [vmem:[#allocation13 + $0x68] sm:$0xff]  ;;  %v3701_v58 = vperm.slane %v691_v55, 2 }
 0x1b9   : > { %1269 = vmatpush.bf16.msrb.mxu2 %v2411_v53  ;;  %v3703_v59 = vperm.slane %v691_v55, 3 }
 0x1ba   : > { %1240 = vmatpush.bf16.msrb.mxu1 %v2407_v61  ;;  %4300 = vst [vmem:[#allocation22_spill] sm:$0xff] %v3701_v58 }
 0x1bb   : > { %1208 = vmatpush.bf16.msrb.mxu0 %v2451_v11  ;;  %4301 = vst [vmem:[#allocation23_spill] sm:$0xff] %v3703_v59 }
 0x1be   : > { %v2928_v23 = vpop.eup %2927  ;;  %1949 = vmatpush.bf16.msra.mxu1 %v2745_v17  ;;  %v2748_v17 = vld [vmem:[#allocation13 + $0x90] sm:$0xff] }
 0x1bf   : > { %v590_v28 = vmul.f32 %v2928_v23, %v3598_v33  ;;  %1209 = vmatpush.bf16.msrb.mxu0 %v2435_v31  ;;  %vm596_vm6 = vweird.f32 %v2928_v23 }
 0x1c0   : > { %vm597_vm8 = vmor %vm595_vm7, %vm596_vm6 }
 0x1c1   : > { %v591_v38 = vmul.f32 %v2928_v23, %v590_v28 }
 0x1c2   : > { %1950 = vmatpush.bf16.msra.mxu1 %v2744_v26  ;;  %v2740_v26 = vld [vmem:[#allocation13 + $0x50] sm:$0xff] }
 0x1c3   : > { %v592_v46 = vmul.f32 0.5, %v591_v38  ;;  %1210 = vmatpush.bf16.msrb.mxu0 %v2419_v47 }
 0x1c5   : > { %v593_v51 = vsub.f32 1.5, %v592_v46  ;;  %v2742_v46 = vld [vmem:[#allocation13 + $0x60] sm:$0xff] }
 0x1c6   : > { %1951 = vmatpush.bf16.msra.mxu1 %v2743_v42 }
 0x1c7   : > { %v594_v13 = vmul.f32 %v2928_v23, %v593_v51  ;;  %1211 = vmatpush.bf16.msrb.mxu0 %v2403_v60  ;;  %v2741_v51 = vld [vmem:[#allocation13 + $0x58] sm:$0xff] }
 0x1c9   : > { %v598_v41 = vsel %vm597_vm8, %v2928_v23, %v594_v13  ;;  %v2760_v23 = vld [vmem:[#allocation13 + $0xf0] sm:$0xff]  ;;  %v1034_v13 = vld [vmem:[#allocation12 + $0x1] ss:$2 sm:$0xf] }
 0x1ca   : > { %v606_v62 = vmul.f32 %v598_v41, %v3528_v22  ;;  %v2753_v22 = vld [vmem:[#allocation13 + $0xb8] sm:$0xff]  ;;  %1952 = vmatpush.bf16.msra.mxu1 %v2742_v46  ;;  %v3705_v60 = vperm.slane %v1034_v13, 0  ;;  %v3707_v61 = vperm.slane %v1034_v13, 1  ;;  %v2739_v46 = vld [vmem:[#allocation13 + $0x48] sm:$0xff] }
 0x1cb   : > { %1978 = vmatpush.bf16.msra.mxu2 %v2753_v22  ;;  %1920 = vmatpush.bf16.msra.mxu0 %v2737_v16  ;;  %v2749_v41 = vld [vmem:[#allocation13 + $0x98] sm:$0xff] }
 0x1cc   : > { %v616_v33 = vmul.f32 %v3539_v2, %v606_v62  ;;  %v2761_v2 = vld [vmem:[#allocation13 + $0xf8] sm:$0xff] }
 0x1cd   : > { %2007 = vmatpush.bf16.msra.mxu3 %v2761_v2 }
 0x1ce   : > { %v626_v3 = vadd.f32 %v3547_v12, %v616_v33  ;;  %1953 = vmatpush.bf16.msra.mxu1 %v2741_v51 }
 0x1cf   : > { %1979 = vmatpush.bf16.msra.mxu2 %v2752_v19  ;;  %1921 = vmatpush.bf16.msra.mxu0 %v2736_v24  ;;  %v2756_v19 = vld [vmem:[#allocation13 + $0xd0] sm:$0xff] }
 0x1d0   : > { %v2781_v5 = vpack.c.bf16 %v626_v3, %v625_v1 }
 0x1d1   : > { %2008 = vmatpush.bf16.msra.mxu3 %v2760_v23 }
 0x1d2   : > { %2785 = vst [vmem:[#allocation2 + $0x8] sm:$0xff] %v2781_v5   ;;  %1954 = vmatpush.bf16.msra.mxu1 %v2740_v26 }
 0x1d3   : > { %1980 = vmatpush.bf16.msra.mxu2 %v2751_v27  ;;  %1922 = vmatpush.bf16.msra.mxu0 %v2735_v40 }
 0x1d5   : > { %2009 = vmatpush.bf16.msra.mxu3 %v2759_v35  ;;  %v3775_v35 = vperm.slane %v1034_v13, 2 }
 0x1d6   : > { %1955 = vmatpush.bf16.msra.mxu1 %v2739_v46 }
 0x1d7   : > { %1923 = vmatpush.bf16.msra.mxu0 %v2734_v50  ;;  %1981 = vmatpush.bf16.msra.mxu2 %v2750_v32 }
 0x1d9   : > { %v2665_v6 = vld [vmem:[#allocation2 + $0x8] sm:$0xff]  ;;  %2010 = vmatpush.bf16.msra.mxu3 %v2758_v56 }
 0x1da   : > { %908 = vmatmul.bf16.gmra.mxu0 %v2665_v6  ;;  %937 = vmatmul.bf16.gmra.mxu1 %v2665_v6 }
 0x1db   : > { %966 = vmatmul.bf16.gmra.mxu2 %v2665_v6  ;;  %995 = vmatmul.bf16.gmra.mxu3 %v2665_v6 }
 0x1dc   : > { %1924 = vmatpush.bf16.msra.mxu0 %v2733_v49  ;;  %1982 = vmatpush.bf16.msra.mxu2 %v2749_v41 }
 0x1dd   : > { %v3637_v12 = vpop.f32.mrf.mxu0  ;;  %2011 = vmatpush.bf16.msra.mxu3 %v2757_v36 }
 0x1de   : > { %v3715_v1 = vadd.f32 %v3637_v12, %v3697_v4 }
 0x1e0   : > { %1983 = vmatpush.bf16.msra.mxu2 %v2748_v17  ;;  %v2730_v17 = vld [vmem:[#allocation13] sm:$0xff] }
 0x1e1   : > { %2012 = vmatpush.bf16.msra.mxu3 %v2756_v19  ;;  %v2738_v19 = vld [vmem:[#allocation13 + $0x40] sm:$0xff] }
 0x1e2   : > { %1956 = vmatpush.bf16.msra.mxu1 %v2738_v19 }
 0x1e4   : > { %v3643_v7 = vpop.f32.mrf.mxu3 }
 0x1e5   : > { %v3645_v8 = vpop.f32.mrf.mxu0 }
 0x1e6   : > { %v3731_v16 = vadd.f32 %v3645_v8, %v3697_v4 }
 0x1ea   : > { %1212 = vmatmul.bf16.vlgmr.msrb.gmra.mxu0 %v3563_v52  ;;  %1241 = vmatmul.bf16.vlgmr.msrb.gmra.mxu1 %v3563_v52 }
 0x1eb   : > { %1270 = vmatmul.bf16.vlgmr.msrb.gmra.mxu2 %v3563_v52  ;;  %1299 = vmatmul.bf16.vlgmr.msrb.gmra.mxu3 %v3563_v52  ;;  %v3639_v52 = vpop.f32.mrf.mxu1 }
 0x1ec   : > { %v3651_v11 = vpop.f32.mrf.mxu3  ;;  %v3719_v3 = vadd.f32 %v3639_v52, %v3699_v57 }
 0x1ed   : > { %v3749_v8 = vadd.f32 %v3651_v11, %v3703_v59 }
 0x1f3   : > { %v3647_v9 = vpop.f32.mrf.mxu1 }
 0x1f4   : > { %v3659_v15 = vpop.f32.mrf.mxu3  ;;  %v3735_v12 = vadd.f32 %v3647_v9, %v3699_v57 }
 0x1fa   : > { %1217 = vmatmul.bf16.gmra.mxu0 %v3574_v63  ;;  %1246 = vmatmul.bf16.gmra.mxu1 %v3574_v63 }
 0x1fb   : > { %1275 = vmatmul.bf16.gmra.mxu2 %v3574_v63  ;;  %1304 = vmatmul.bf16.gmra.mxu3 %v3574_v63  ;;  %v3641_v63 = vpop.f32.mrf.mxu2  ;;  %v3655_v18 = vpop.f32.mrf.mxu1 }
 0x1fc   : > { %v3667_v28 = vpop.f32.mrf.mxu3  ;;  %v3723_v5 = vadd.f32 %v3641_v63, %v3701_v58  ;;  %v3757_v24 = vadd.f32 %v3655_v18, %v3699_v57 }
 0x1fd   : > { %v3791_v49 = vadd.f32 %v3667_v28, %v3703_v59 }
 0x203   : > { %v3649_v10 = vpop.f32.mrf.mxu2  ;;  %v3663_v21 = vpop.f32.mrf.mxu1 }
 0x204   : > { %v3675_v30 = vpop.f32.mrf.mxu3  ;;  %v3745_v23 = vadd.f32 %v3649_v10, %v3701_v58  ;;  %v3781_v40 = vadd.f32 %v3663_v21, %v3699_v57 }
 0x205   : > { %v3807_v32 = vadd.f32 %v3675_v30, %v3703_v59 }
 0x207   : > { %4306 = vst [vmem:[#allocation28_spill] sm:$0xff] %v3807_v32 }
 0x20a   : > { %1222 = vmatmul.bf16.gmra.mxu0 %v3580_v0  ;;  %1251 = vmatmul.bf16.gmra.mxu1 %v3580_v0 }
 0x20b   : > { %1280 = vmatmul.bf16.gmra.mxu2 %v3580_v0  ;;  %1309 = vmatmul.bf16.gmra.mxu3 %v3580_v0  ;;  %v3653_v0 = vpop.f32.mrf.mxu0  ;;  %v3657_v14 = vpop.f32.mrf.mxu2 }
 0x20c   : > { %v3671_v34 = vpop.f32.mrf.mxu1  ;;  %v3683_v43 = vpop.f32.mrf.mxu3  ;;  %v3753_v9 = vadd.f32 %v3653_v0, %v3697_v4  ;;  %v3761_v27 = vadd.f32 %v3657_v14, %v3701_v58  ;;  %v3769_v0 = vadd.f32 %v3659_v15, %v3703_v59  ;;  %v3777_v14 = vperm.slane %v1034_v13, 3 }
 0x20d   : > { %v3799_v21 = vadd.f32 %v3671_v34, %v3699_v57  ;;  %v3837_v26 = vadd.f32 %v3683_v43, %v3703_v59 }
 0x20f   : > { %4304 = vst [vmem:[#allocation26_spill] sm:$0xff] %v3799_v21 }
 0x210   : > { %4309 = vst [vmem:[#allocation31_spill] sm:$0xff] %v3837_v26 }
 0x213   : > { %v3661_v20 = vpop.f32.mrf.mxu0  ;;  %v3665_v29 = vpop.f32.mrf.mxu2 }
 0x214   : > { %v3679_v39 = vpop.f32.mrf.mxu1  ;;  %v3773_v18 = vadd.f32 %v3661_v20, %v3697_v4  ;;  %v3785_v42 = vadd.f32 %v3665_v29, %v3701_v58  ;;  %v2731_v20 = vld [vmem:[#allocation13 + $0x8] sm:$0xff] }
 0x215   : > { %v3815_v34 = vadd.f32 %v3679_v39, %v3699_v57 }
 0x217   : > { %4307 = vst [vmem:[#allocation29_spill] sm:$0xff] %v3815_v34 }
 0x21a   : > { %1227 = vmatmul.bf16.gmra.mxu0 %v2665_v6  ;;  %1256 = vmatmul.bf16.gmra.mxu1 %v2665_v6 }
 0x21b   : > { %1285 = vmatmul.bf16.gmra.mxu2 %v2665_v6  ;;  %1314 = vmatmul.bf16.gmra.mxu3 %v2665_v6  ;;  %v3669_v31 = vpop.f32.mrf.mxu0  ;;  %v3673_v37 = vpop.f32.mrf.mxu2  ;;  %v3727_v6 = vadd.f32 %v3643_v7, %v3703_v59  ;;  %v2732_v7 = vld [vmem:[#allocation13 + $0x10] sm:$0xff] }
 0x21c   : > { %1925 = vmatpush.bf16.msra.mxu0 %v2732_v7  ;;  %v3795_v51 = vadd.f32 %v3669_v31, %v3697_v4  ;;  %v3803_v29 = vadd.f32 %v3673_v37, %v3701_v58 }
 0x21e   : > { %4305 = vst [vmem:[#allocation27_spill] sm:$0xff] %v3803_v29 }
 0x220   : > { %1926 = vmatpush.bf16.msra.mxu0 %v2731_v20 }
 0x223   : > { %v3677_v38 = vpop.f32.mrf.mxu0  ;;  %v3681_v25 = vpop.f32.mrf.mxu2 }
 0x224   : > { %v3811_v28 = vadd.f32 %v3677_v38, %v3697_v4  ;;  %v3833_v7 = vadd.f32 %v3681_v25, %v3701_v58  ;;  %v2747_v25 = vld [vmem:[#allocation13 + $0x88] sm:$0xff]  ;;  %1927 = vmatpush.bf16.msra.mxu0 %v2730_v17 }
 0x225   : > { %1984 = vmatpush.bf16.msra.mxu2 %v2747_v25 }
 0x226   : > { %4308 = vst [vmem:[#allocation30_spill] sm:$0xff] %v3833_v7 }
 0x257   : > { %v3685_v44 = vpop.f32.mrf.mxu0  ;;  %v3687_v45 = vpop.f32.mrf.mxu1 }
 0x258   : > { %v3849_v43 = vadd.f32 %v3685_v44, %v3697_v4 }
 0x25a   : > { %4310 = vst [vmem:[#allocation32_spill] sm:$0xff] %v3849_v43 }
 0x25e   : > { %v3689_v47 = vpop.f32.mrf.mxu2  ;;  %v3691_v48 = vpop.f32.mrf.mxu3 }
 0x25f   : > { %4299 = vst [vmem:[#allocation21_spill] sm:$0xff] %v3691_v48  ;;  %v3693_v53 = vpop.f32.mrf.mxu0  ;;  %v3695_v54 = vpop.f32.mrf.mxu1  ;;  %v3861_v44 = vadd.f32 %v3689_v47, %v3701_v58 }
 0x260   : > { %v3865_v17 = vadd.f32 %v3693_v53, %v3697_v4 }
 0x261   : > { %4312 = vst [vmem:[#allocation34_spill] sm:$0xff] %v3861_v44  ;;  %v2754_v44 = vld [vmem:[#allocation13 + $0xc0] sm:$0xff] }
 0x262   : > { %4313 = vst [vmem:[#allocation35_spill] sm:$0xff] %v3865_v17 }
 0x266   : > { %v3709_v62 = vpop.f32.mrf.mxu2  ;;  %v3711_v33 = vpop.f32.mrf.mxu3 }
 0x267   : > { %4302 = vst [vmem:[#allocation24_spill] sm:$0xff] %v3709_v62  ;;  %v1213_v22 = vpop.f32.mrf.mxu0  ;;  %v1242_v2 = vpop.f32.mrf.mxu1 }
 0x268   : > { %4303 = vst [vmem:[#allocation25_spill] sm:$0xff] %v3711_v33  ;;  %v3738_v52 = vadd.f32 %v1213_v22, %v3705_v60  ;;  %v3741_v63 = vadd.f32 %v1242_v2, %v3707_v61 }
 0x26a   : > { %v1320_v10 = vmul.f32 %v3738_v52, %v3738_v52  ;;  %v1321_v11 = vmul.f32 %v3741_v63, %v3741_v63 }
 0x26c   : > { %v1352_v15 = vmul.f32 %v1320_v10, %v3738_v52  ;;  %v1353_v50 = vmul.f32 %v1321_v11, %v3741_v63 }
 0x26e   : > { %v1384_v55 = vmul.f32 0.044715, %v1352_v15  ;;  %v1385_v56 = vmul.f32 0.044715, %v1353_v50  ;;  %v1271_v31 = vpop.f32.mrf.mxu2  ;;  %v1300_v13 = vpop.f32.mrf.mxu3 }
 0x26f   : > { %v3818_v41 = vadd.f32 %v1271_v31, %v3775_v35  ;;  %v3821_v37 = vadd.f32 %v1300_v13, %v3777_v14  ;;  %v1215_v30 = vpop.f32.mrf.mxu0  ;;  %v1244_v36 = vpop.f32.mrf.mxu1  ;;  %v3855_v13 = vadd.f32 %v3687_v45, %v3699_v57  ;;  %v3869_v45 = vadd.f32 %v3695_v54, %v3699_v57 }
 0x270   : > { %v1416_v38 = vadd.f32 %v1384_v55, %v3738_v52  ;;  %v1417_v22 = vadd.f32 %v1385_v56, %v3741_v63  ;;  %v3826_v2 = vadd.f32 %v1215_v30, %v3705_v60  ;;  %v3829_v39 = vadd.f32 %v1244_v36, %v3707_v61  ;;  %v2755_v55 = vld [vmem:[#allocation13 + $0xc8] sm:$0xff] }
 0x271   : > { %v1322_v10 = vmul.f32 %v3818_v41, %v3818_v41  ;;  %v1323_v11 = vmul.f32 %v3821_v37, %v3821_v37  ;;  %4311 = vst [vmem:[#allocation33_spill] sm:$0xff] %v3855_v13  ;;  %2013 = vmatpush.bf16.msra.mxu3 %v2755_v55 }
 0x272   : > { %v1448_v15 = vmul.f32 0.7978846, %v1416_v38  ;;  %v1449_v50 = vmul.f32 0.7978846, %v1417_v22  ;;  %v1324_v20 = vmul.f32 %v3826_v2, %v3826_v2  ;;  %v1325_v46 = vmul.f32 %v3829_v39, %v3829_v39  ;;  %4314 = vst [vmem:[#allocation36_spill] sm:$0xff] %v3869_v45 }
 0x273   : > { %v1354_v56 = vmul.f32 %v1322_v10, %v3818_v41  ;;  %v1355_v31 = vmul.f32 %v1323_v11, %v3821_v37 }
 0x274   : > { %2929 = vtanh.f32 %v1448_v15  ;;  %v1356_v30 = vmul.f32 %v1324_v20, %v3826_v2  ;;  %v1357_v36 = vmul.f32 %v1325_v46, %v3829_v39  ;;  %v2746_v20 = vld [vmem:[#allocation13 + $0x80] sm:$0xff] }
 0x275   : > { %2931 = vtanh.f32 %v1449_v50  ;;  %v1386_v38 = vmul.f32 0.044715, %v1354_v56  ;;  %v1387_v22 = vmul.f32 0.044715, %v1355_v31  ;;  %1985 = vmatpush.bf16.msra.mxu2 %v2746_v20  ;;  %2014 = vmatpush.bf16.msra.mxu3 %v2754_v44 }
 0x276   : > { %v1388_v19 = vmul.f32 0.044715, %v1356_v30  ;;  %v1389_v10 = vmul.f32 0.044715, %v1357_v36  ;;  %v1273_v11 = vpop.f32.mrf.mxu2  ;;  %v1302_v15 = vpop.f32.mrf.mxu3 }
 0x277   : > { %v1418_v46 = vadd.f32 %v1386_v38, %v3818_v41  ;;  %v1419_v47 = vadd.f32 %v1387_v22, %v3821_v37  ;;  %v3874_v50 = vadd.f32 %v1273_v11, %v3775_v35  ;;  %v3877_v25 = vadd.f32 %v1302_v15, %v3777_v14  ;;  %v1218_v53 = vpop.f32.mrf.mxu0  ;;  %v1247_v4 = vpop.f32.mrf.mxu1 }
 0x278   : > { %v1420_v54 = vadd.f32 %v1388_v19, %v3826_v2  ;;  %v1421_v57 = vadd.f32 %v1389_v10, %v3829_v39  ;;  %v3882_v55 = vadd.f32 %v1218_v53, %v3705_v60  ;;  %v3885_v56 = vadd.f32 %v1247_v4, %v3707_v61 }
 0x279   : > { %v1450_v31 = vmul.f32 0.7978846, %v1418_v46  ;;  %v1451_v30 = vmul.f32 0.7978846, %v1419_v47  ;;  %v1326_v36 = vmul.f32 %v3874_v50, %v3874_v50  ;;  %v1327_v38 = vmul.f32 %v3877_v25, %v3877_v25 }
 0x27a   : > { %v2930_v22 = vpop.eup %2929  ;;  %v1452_v11 = vmul.f32 0.7978846, %v1420_v54  ;;  %v1453_v19 = vmul.f32 0.7978846, %v1421_v57  ;;  %v1328_v10 = vmul.f32 %v3882_v55, %v3882_v55  ;;  %v1329_v15 = vmul.f32 %v3885_v56, %v3885_v56 }
 0x27b   : > { %v2932_v53 = vpop.eup %2931  ;;  %v1512_v4 = vadd.f32 1.0, %v2930_v22  ;;  %2933 = vtanh.f32 %v1450_v31  ;;  %v1358_v20 = vmul.f32 %v1326_v36, %v3874_v50  ;;  %v1359_v46 = vmul.f32 %v1327_v38, %v3877_v25 }
 0x27c   : > { %v1513_v47 = vadd.f32 1.0, %v2932_v53  ;;  %2935 = vtanh.f32 %v1451_v30  ;;  %v1360_v33 = vmul.f32 %v1328_v10, %v3882_v55  ;;  %v1361_v54 = vmul.f32 %v1329_v15, %v3885_v56 }
 0x27d   : > { %v1544_v57 = vmul.f32 0.5, %v1512_v4  ;;  %2937 = vtanh.f32 %v1452_v11  ;;  %v1390_v48 = vmul.f32 0.044715, %v1358_v20  ;;  %v1391_v59 = vmul.f32 0.044715, %v1359_v46 }
 0x27e   : > { %v1545_v45 = vmul.f32 0.5, %v1513_v47  ;;  %2939 = vtanh.f32 %v1453_v19  ;;  %v1392_v13 = vmul.f32 0.044715, %v1360_v33  ;;  %v1393_v22 = vmul.f32 0.044715, %v1361_v54  ;;  %v1276_v31 = vpop.f32.mrf.mxu2  ;;  %v1305_v17 = vpop.f32.mrf.mxu3 }
 0x27f   : > { %v3900_v36 = vmul.f32 %v1544_v57, %v3738_v52  ;;  %v1422_v30 = vadd.f32 %v1390_v48, %v3874_v50  ;;  %v1423_v38 = vadd.f32 %v1391_v59, %v3877_v25  ;;  %v3905_v10 = vadd.f32 %v1276_v31, %v3775_v35  ;;  %v1220_v11 = vpop.f32.mrf.mxu0  ;;  %v1249_v15 = vpop.f32.mrf.mxu1 }
 0x280   : > { %v3908_v53 = vmul.f32 %v1545_v45, %v3741_v63  ;;  %v1424_v33 = vadd.f32 %v1392_v13, %v3882_v55  ;;  %v1425_v19 = vadd.f32 %v1393_v22, %v3885_v56  ;;  %v3913_v52 = vadd.f32 %v1305_v17, %v3777_v14 }
 0x281   : > { %v2934_v4 = vpop.eup %2933  ;;  %v1454_v48 = vmul.f32 0.7978846, %v1422_v30  ;;  %v1455_v20 = vmul.f32 0.7978846, %v1423_v38  ;;  %v1330_v59 = vmul.f32 %v3905_v10, %v3905_v10  ;;  %v3918_v46 = vadd.f32 %v1220_v11, %v3705_v60 }
 0x282   : > { %v2936_v44 = vpop.eup %2935  ;;  %v1514_v47 = vadd.f32 1.0, %v2934_v4  ;;  %v1456_v63 = vmul.f32 0.7978846, %v1424_v33  ;;  %v1457_v45 = vmul.f32 0.7978846, %v1425_v19  ;;  %v1331_v13 = vmul.f32 %v3913_v52, %v3913_v52 }
 0x283   : > { %v2938_v54 = vpop.eup %2937  ;;  %v1515_v57 = vadd.f32 1.0, %v2936_v44  ;;  %2941 = vtanh.f32 %v1454_v48  ;;  %v1362_v17 = vmul.f32 %v1330_v59, %v3905_v10  ;;  %v1332_v22 = vmul.f32 %v3918_v46, %v3918_v46 }
 0x284   : > { %v2940_v31 = vpop.eup %2939  ;;  %v1546_v30 = vmul.f32 0.5, %v1514_v47  ;;  %v1516_v38 = vadd.f32 1.0, %v2938_v54  ;;  %2943 = vtanh.f32 %v1455_v20  ;;  %v1363_v11 = vmul.f32 %v1331_v13, %v3913_v52 }
 0x285   : > { %v1547_v4 = vmul.f32 0.5, %v1515_v57  ;;  %v1517_v33 = vadd.f32 1.0, %v2940_v31  ;;  %2945 = vtanh.f32 %v1456_v63  ;;  %v1394_v19 = vmul.f32 0.044715, %v1362_v17 }
 0x286   : > { %v3927_v43 = vmul.f32 %v1546_v30, %v3818_v41  ;;  %v1548_v44 = vmul.f32 0.5, %v1516_v38  ;;  %2947 = vtanh.f32 %v1457_v45  ;;  %v1395_v48 = vmul.f32 0.044715, %v1363_v11  ;;  %v1278_v59 = vpop.f32.mrf.mxu2  ;;  %v1307_v26 = vpop.f32.mrf.mxu3 }
 0x287   : > { %v3930_v32 = vmul.f32 %v1547_v4, %v3821_v37  ;;  %v1549_v47 = vmul.f32 0.5, %v1517_v33  ;;  %v1426_v20 = vadd.f32 %v1394_v19, %v3905_v10  ;;  %v1364_v13 = vmul.f32 %v1332_v22, %v3918_v46  ;;  %v1223_v54 = vpop.f32.mrf.mxu0  ;;  %v1252_v57 = vpop.f32.mrf.mxu1 }
 0x288   : > { %v1580_v63 = vmul.f32 %v1548_v44, %v3826_v2  ;;  %v1427_v41 = vadd.f32 %v1395_v48, %v3913_v52  ;;  %v3937_v17 = vadd.f32 %v1249_v15, %v3707_v61  ;;  %v3940_v45 = vadd.f32 %v1278_v59, %v3775_v35 }
 0x289   : > { %v2942_v31 = vpop.eup %2941  ;;  %v3943_v37 = vmul.f32 %v1549_v47, %v3829_v39  ;;  %v1458_v30 = vmul.f32 0.7978846, %v1426_v20  ;;  %v1396_v38 = vmul.f32 0.044715, %v1364_v13  ;;  %v3946_v22 = vadd.f32 %v1307_v26, %v3777_v14 }
 0x28a   : > { %v2944_v11 = vpop.eup %2943  ;;  %v1518_v4 = vadd.f32 1.0, %v2942_v31  ;;  %v1459_v2 = vmul.f32 0.7978846, %v1427_v41  ;;  %v1333_v33 = vmul.f32 %v3937_v17, %v3937_v17  ;;  %v1334_v15 = vmul.f32 %v3940_v45, %v3940_v45 }
 0x28b   : > { %v3952_v19 = vpop.eup %2945  ;;  %v1519_v44 = vadd.f32 1.0, %v2944_v11  ;;  %2949 = vtanh.f32 %v1458_v30  ;;  %v1428_v39 = vadd.f32 %v1396_v38, %v3918_v46  ;;  %v1335_v48 = vmul.f32 %v3946_v22, %v3946_v22 }
 0x28c   : > { %v3957_v26 = vpop.eup %2947  ;;  %v1550_v59 = vmul.f32 0.5, %v1518_v4  ;;  %2951 = vtanh.f32 %v1459_v2  ;;  %v1365_v47 = vmul.f32 %v1333_v33, %v3937_v17  ;;  %v1366_v20 = vmul.f32 %v1334_v15, %v3940_v45 }
 0x28d   : > { %v1551_v13 = vmul.f32 0.5, %v1519_v44  ;;  %v1460_v41 = vmul.f32 0.7978846, %v1428_v39  ;;  %v1367_v31 = vmul.f32 %v1335_v48, %v3946_v22  ;;  %v3963_v11 = vadd.f32 %v1223_v54, %v3705_v60 }
 0x28e   : > { %v3966_v30 = vmul.f32 %v1550_v59, %v3874_v50  ;;  %v1397_v38 = vmul.f32 0.044715, %v1365_v47  ;;  %v1398_v29 = vmul.f32 0.044715, %v1366_v20  ;;  %v3969_v7 = vadd.f32 %v1252_v57, %v3707_v61  ;;  %v1281_v4 = vpop.f32.mrf.mxu2  ;;  %v1310_v2 = vpop.f32.mrf.mxu3 }
 0x28f   : > { %v3972_v33 = vmul.f32 %v1551_v13, %v3877_v25  ;;  %2953 = vtanh.f32 %v1460_v41  ;;  %v1399_v15 = vmul.f32 0.044715, %v1367_v31  ;;  %v1336_v44 = vmul.f32 %v3963_v11, %v3963_v11  ;;  %v1225_v54 = vpop.f32.mrf.mxu0  ;;  %v1254_v41 = vpop.f32.mrf.mxu1 }
 0x290   : > { %v1429_v39 = vadd.f32 %v1397_v38, %v3937_v17  ;;  %v1430_v50 = vadd.f32 %v1398_v29, %v3940_v45  ;;  %v1337_v48 = vmul.f32 %v3969_v7, %v3969_v7  ;;  %v3981_v57 = vadd.f32 %v1281_v4, %v3775_v35 }
 0x291   : > { %v3983_v59 = vpop.eup %2949  ;;  %v1431_v25 = vadd.f32 %v1399_v15, %v3946_v22  ;;  %v1368_v47 = vmul.f32 %v1336_v44, %v3963_v11  ;;  %v3988_v20 = vadd.f32 %v1310_v2, %v3777_v14  ;;  %v1608_v13 = vmul.f32 %v3900_v36, %v3715_v1 }
 0x292   : > { %v3992_v29 = vpop.eup %2951  ;;  %v1461_v31 = vmul.f32 0.7978846, %v1429_v39  ;;  %v1462_v38 = vmul.f32 0.7978846, %v1430_v50  ;;  %v1369_v4 = vmul.f32 %v1337_v48, %v3969_v7  ;;  %v1338_v62 = vmul.f32 %v3981_v57, %v3981_v57 }
 0x293   : > { %4315 = vst [vmem:[#allocation37_spill] sm:$0xff] %v3988_v20  ;;  %v1463_v58 = vmul.f32 0.7978846, %v1431_v25  ;;  %v1400_v15 = vmul.f32 0.044715, %v1368_v47  ;;  %v1339_v44 = vmul.f32 %v3988_v20, %v3988_v20  ;;  %v1612_v2 = vmul.f32 %v1580_v63, %v3731_v16 }
 0x294   : > { %2955 = vtanh.f32 %v1461_v31  ;;  %v1401_v34 = vmul.f32 0.044715, %v1369_v4  ;;  %v1370_v1 = vmul.f32 %v1338_v62, %v3981_v57  ;;  %v1609_v36 = vmul.f32 %v3908_v53, %v3719_v3 }
 0x295   : > { %v4003_v39 = vpop.eup %2953  ;;  %2957 = vtanh.f32 %v1462_v38  ;;  %v1432_v50 = vadd.f32 %v1400_v15, %v3963_v11  ;;  %v1371_v48 = vmul.f32 %v1339_v44, %v3988_v20  ;;  %v1648_v25 = vpack.c.bf16 %v1612_v2, %v1608_v13 }
 0x296   : > { %2959 = vtanh.f32 %v1463_v58  ;;  %v1433_v47 = vadd.f32 %v1401_v34, %v3969_v7  ;;  %v1402_v21 = vmul.f32 0.044715, %v1370_v1  ;;  %v1613_v16 = vmul.f32 %v3943_v37, %v3735_v12  ;;  %v1283_v63 = vpop.f32.mrf.mxu2  ;;  %v1312_v62 = vpop.f32.mrf.mxu3 }
 0x297   : > { %v1464_v31 = vmul.f32 0.7978846, %v1432_v50  ;;  %v1403_v4 = vmul.f32 0.044715, %v1371_v48  ;;  %1928 = vmatmul.bf16.vlgmr.msra.gmra.mxu0 %v1648_v25  ;;  %v4011_v3 = vadd.f32 %v1225_v54, %v3705_v60  ;;  %v4014_v53 = vadd.f32 %v1254_v41, %v3707_v61  ;;  %v1228_v15 = vpop.f32.mrf.mxu0  ;;  %v1257_v48 = vpop.f32.mrf.mxu1 }
 0x298   : > { %v1465_v38 = vmul.f32 0.7978846, %v1433_v47  ;;  %v1434_v58 = vadd.f32 %v1402_v21, %v3981_v57  ;;  %v1649_v13 = vpack.c.bf16 %v1613_v16, %v1609_v36  ;;  %v1610_v34 = vmul.f32 %v3927_v43, %v3723_v5 }
 0x299   : > { %2961 = vtanh.f32 %v1464_v31  ;;  %v1435_v12 = vadd.f32 %v1403_v4, %v3988_v20  ;;  %v1340_v37 = vmul.f32 %v4011_v3, %v4011_v3  ;;  %v1341_v54 = vmul.f32 %v4014_v53, %v4014_v53 }
 0x29a   : > { %v4024_v44 = vpop.eup %2955  ;;  %2963 = vtanh.f32 %v1465_v38  ;;  %v1466_v41 = vmul.f32 0.7978846, %v1434_v58  ;;  %1957 = vmatmul.bf16.vlgmr.msra.gmra.mxu1 %v1649_v13  ;;  %v1614_v21 = vmul.f32 %v3966_v30, %v3745_v23  ;;  %v1611_v5 = vmul.f32 %v3930_v32, %v3727_v6 }
 0x29b   : > { %v4030_v43 = vpop.eup %2957  ;;  %v1467_v2 = vmul.f32 0.7978846, %v1435_v12  ;;  %v1372_v1 = vmul.f32 %v1340_v37, %v4011_v3  ;;  %v1373_v36 = vmul.f32 %v1341_v54, %v4014_v53  ;;  %v1615_v50 = vmul.f32 %v3972_v33, %v3749_v8 }
 0x29c   : > { %v4036_v25 = vpop.eup %2959  ;;  %2965 = vtanh.f32 %v1466_v41  ;;  %v1650_v47 = vpack.c.bf16 %v1614_v21, %v1610_v34  ;;  %v4039_v23 = vadd.f32 %v1283_v63, %v3775_v35  ;;  %v4042_v6 = vadd.f32 %v1312_v62, %v3777_v14 }
 0x29d   : > { %2967 = vtanh.f32 %v1467_v2  ;;  %v1404_v32 = vmul.f32 0.044715, %v1372_v1  ;;  %v1405_v30 = vmul.f32 0.044715, %v1373_v36  ;;  %v1651_v16 = vpack.c.bf16 %v1615_v50, %v1611_v5 }
 0x29e   : > { %1986 = vmatmul.bf16.vlgmr.msra.gmra.mxu2 %v1650_v47  ;;  %v1342_v31 = vmul.f32 %v4039_v23, %v4039_v23  ;;  %v1343_v8 = vmul.f32 %v4042_v6, %v4042_v6  ;;  %v4049_v33 = vadd.f32 %v1228_v15, %v3705_v60  ;;  %v4052_v63 = vadd.f32 %v1257_v48, %v3707_v61  ;;  %v1286_v4 = vpop.f32.mrf.mxu2  ;;  %v1315_v62 = vpop.f32.mrf.mxu3 }
 0x29f   : > { %v4054_v38 = vpop.eup %2961  ;;  %v1436_v58 = vadd.f32 %v1404_v32, %v4011_v3  ;;  %v1437_v13 = vadd.f32 %v1405_v30, %v4014_v53  ;;  %2015 = vmatmul.bf16.vlgmr.msra.gmra.mxu3 %v1651_v16  ;;  %v4059_v34 = vadd.f32 %v1286_v4, %v3775_v35  ;;  %v4062_v12 = vadd.f32 %v1315_v62, %v3777_v14  ;;  %v1230_v16 = vpop.f32.mrf.mxu0 }
 0x2a0   : > { %v4064_v15 = vpop.eup %2963  ;;  %v1374_v37 = vmul.f32 %v1342_v31, %v4039_v23  ;;  %v1375_v54 = vmul.f32 %v1343_v8, %v4042_v6  ;;  %v1344_v41 = vmul.f32 %v4049_v33, %v4049_v33  ;;  %v1345_v21 = vmul.f32 %v4052_v63, %v4052_v63 }
 0x2a1   : > { %v1468_v5 = vmul.f32 0.7978846, %v1436_v58  ;;  %v1469_v2 = vmul.f32 0.7978846, %v1437_v13  ;;  %v1346_v1 = vmul.f32 %v4059_v34, %v4059_v34  ;;  %v1347_v36 = vmul.f32 %v4062_v12, %v4062_v12 }
 0x2a2   : > { %v4076_v50 = vpop.eup %2965  ;;  %v1406_v48 = vmul.f32 0.044715, %v1374_v37  ;;  %v1407_v47 = vmul.f32 0.044715, %v1375_v54  ;;  %v1376_v32 = vmul.f32 %v1344_v41, %v4049_v33  ;;  %v1377_v30 = vmul.f32 %v1345_v21, %v4052_v63 }
 0x2a3   : > { %v4080_v31 = vpop.eup %2967  ;;  %2969 = vtanh.f32 %v1468_v5  ;;  %v1378_v8 = vmul.f32 %v1346_v1, %v4059_v34  ;;  %v1379_v4 = vmul.f32 %v1347_v36, %v4062_v12  ;;  %v1520_v62 = vadd.f32 1.0, %v3952_v19 }
 0x2a4   : > { %4316 = vst [vmem:[#allocation38_spill] sm:$0xff] %v4080_v31  ;;  %2971 = vtanh.f32 %v1469_v2  ;;  %v1438_v58 = vadd.f32 %v1406_v48, %v4039_v23  ;;  %v1439_v13 = vadd.f32 %v1407_v47, %v4042_v6  ;;  %v1408_v37 = vmul.f32 0.044715, %v1376_v32 }
 0x2a5   : > { %v1409_v54 = vmul.f32 0.044715, %v1377_v30  ;;  %v1410_v41 = vmul.f32 0.044715, %v1378_v8  ;;  %v1411_v20 = vmul.f32 0.044715, %v1379_v4  ;;  %v4088_v21 = vadd.f32 %v1230_v16, %v3705_v60  ;;  %v1259_v60 = vpop.f32.mrf.mxu1 }
 0x2a6   : > { %v1470_v31 = vmul.f32 0.7978846, %v1438_v58  ;;  %v1471_v5 = vmul.f32 0.7978846, %v1439_v13  ;;  %v1440_v1 = vadd.f32 %v1408_v37, %v4049_v33  ;;  %v1524_v36 = vadd.f32 1.0, %v4003_v39 }
 0x2a7   : > { %v1441_v19 = vadd.f32 %v1409_v54, %v4052_v63  ;;  %v1442_v2 = vadd.f32 %v1410_v41, %v4059_v34  ;;  %v1443_v48 = vadd.f32 %v1411_v20, %v4062_v12  ;;  %v1552_v47 = vmul.f32 0.5, %v1520_v62 }
 0x2a8   : > { %2973 = vtanh.f32 %v1470_v31  ;;  %v1472_v32 = vmul.f32 0.7978846, %v1440_v1  ;;  %v1556_v30 = vmul.f32 0.5, %v1524_v36  ;;  %v1521_v8 = vadd.f32 1.0, %v3957_v26 }
 0x2a9   : > { %v4096_v16 = vpop.eup %2969  ;;  %2975 = vtanh.f32 %v1471_v5  ;;  %v1473_v4 = vmul.f32 0.7978846, %v1441_v19  ;;  %v1474_v58 = vmul.f32 0.7978846, %v1442_v2  ;;  %v1475_v13 = vmul.f32 0.7978846, %v1443_v48 }
 0x2aa   : > { %v4098_v39 = vpop.eup %2971  ;;  %2977 = vtanh.f32 %v1472_v32  ;;  %v1584_v37 = vmul.f32 %v1552_v47, %v3882_v55  ;;  %v1588_v20 = vmul.f32 %v1556_v30, %v3918_v46  ;;  %v1525_v31 = vadd.f32 1.0, %v4024_v44 }
 0x2ab   : > { %2979 = vtanh.f32 %v1473_v4  ;;  %v1553_v62 = vmul.f32 0.5, %v1521_v8  ;;  %v1348_v26 = vmul.f32 %v4088_v21, %v4088_v21  ;;  %v4106_v54 = vadd.f32 %v1259_v60, %v3707_v61 }
 0x2ac   : > { %2981 = vtanh.f32 %v1474_v58  ;;  %v1616_v41 = vmul.f32 %v1584_v37, %v3753_v9  ;;  %v1620_v5 = vmul.f32 %v1588_v20, %v3773_v18  ;;  %v1557_v1 = vmul.f32 0.5, %v1525_v31  ;;  %v1288_v9 = vpop.f32.mrf.mxu2  ;;  %v1317_v20 = vpop.f32.mrf.mxu3 }
 0x2ad   : > { %2983 = vtanh.f32 %v1475_v13  ;;  %v1585_v55 = vmul.f32 %v1553_v62, %v3885_v56  ;;  %v1380_v46 = vmul.f32 %v1348_v26, %v4088_v21  ;;  %v1349_v44 = vmul.f32 %v4106_v54, %v4106_v54 }
 0x2ae   : > { %v2974_v36 = vpop.eup %2973  ;;  %v1652_v19 = vpack.c.bf16 %v1620_v5, %v1616_v41  ;;  %v1589_v2 = vmul.f32 %v1557_v1, %v3937_v17  ;;  %v1522_v61 = vadd.f32 1.0, %v3983_v59  ;;  %v1526_v48 = vadd.f32 1.0, %v4030_v43 }
 0x2af   : > { %v4117_v47 = vpop.eup %2975  ;;  %v1617_v18 = vmul.f32 %v1585_v55, %v3757_v24  ;;  %v1412_v32 = vmul.f32 0.044715, %v1380_v46  ;;  %v1381_v56 = vmul.f32 %v1349_v44, %v4106_v54  ;;  %v1523_v30 = vadd.f32 1.0, %v3992_v29 }
 0x2b0   : > { %v4122_v8 = vpop.eup %2977  ;;  %1933 = vmatmul.bf16.gmra.mxu0 %v1652_v19  ;;  %v1621_v60 = vmul.f32 %v1589_v2, %v3781_v40  ;;  %v1554_v17 = vmul.f32 0.5, %v1522_v61  ;;  %v1558_v4 = vmul.f32 0.5, %v1526_v48  ;;  %v1527_v59 = vadd.f32 1.0, %v4036_v25 }
 0x2b1   : > { %v4126_v43 = vpop.eup %2979  ;;  %v1444_v58 = vadd.f32 %v1412_v32, %v4088_v21  ;;  %v1413_v13 = vmul.f32 0.044715, %v1381_v56  ;;  %v1555_v24 = vmul.f32 0.5, %v1523_v30  ;;  %v4130_v37 = vadd.f32 %v1288_v9, %v3775_v35 }
 0x2b2   : > { %v4132_v29 = vpop.eup %2981  ;;  %v1653_v31 = vpack.c.bf16 %v1621_v60, %v1617_v18  ;;  %v1586_v62 = vmul.f32 %v1554_v17, %v3905_v10  ;;  %v1590_v40 = vmul.f32 %v1558_v4, %v3940_v45  ;;  %v1559_v26 = vmul.f32 0.5, %v1527_v59 }
 0x2b3   : > { %v4136_v41 = vpop.eup %2983  ;;  %v1476_v25 = vmul.f32 0.7978846, %v1444_v58  ;;  %v1445_v5 = vadd.f32 %v1413_v13, %v4106_v54  ;;  %v1587_v1 = vmul.f32 %v1555_v24, %v3913_v52  ;;  %v1350_v35 = vmul.f32 %v4130_v37, %v4130_v37 }
 0x2b4   : > { %1962 = vmatmul.bf16.gmra.mxu1 %v1653_v31  ;;  %v1618_v55 = vmul.f32 %v1586_v62, %v3761_v27  ;;  %v1622_v46 = vmul.f32 %v1590_v40, %v3785_v42  ;;  %v1591_v10 = vmul.f32 %v1559_v26, %v3946_v22  ;;  %v4146_v45 = vadd.f32 %v1317_v20, %v3777_v14  ;;  %v4317_v40 = vld [vmem:[#allocation26_spill] sm:$0xff] }
 0x2b5   : > { %2985 = vtanh.f32 %v1476_v25  ;;  %v1477_v44 = vmul.f32 0.7978846, %v1445_v5  ;;  %v1619_v19 = vmul.f32 %v1587_v1, %v3769_v0  ;;  %v1382_v2 = vmul.f32 %v1350_v35, %v4130_v37  ;;  %v4319_v1 = vld [vmem:[#allocation38_spill] sm:$0xff] }
 0x2b6   : > { %v1654_v52 = vpack.c.bf16 %v1622_v46, %v1618_v55  ;;  %v1623_v61 = vmul.f32 %v1591_v10, %v3791_v49  ;;  %v1351_v48 = vmul.f32 %v4146_v45, %v4146_v45  ;;  %v1528_v27 = vadd.f32 1.0, %v4054_v38  ;;  %v4320_v55 = vld [vmem:[#allocation22_spill] sm:$0xff] }
 0x2b7   : > { %2987 = vtanh.f32 %v1477_v44  ;;  %v1414_v42 = vmul.f32 0.044715, %v1382_v2  ;;  %v1532_v22 = vadd.f32 1.0, %v4096_v16  ;;  %v1529_v14 = vadd.f32 1.0, %v4064_v15 }
 0x2b8   : > { %1991 = vmatmul.bf16.gmra.mxu2 %v1654_v52  ;;  %v1655_v9 = vpack.c.bf16 %v1623_v61, %v1619_v19  ;;  %v1383_v0 = vmul.f32 %v1351_v48, %v4146_v45  ;;  %v1560_v18 = vmul.f32 0.5, %v1528_v27  ;;  %v1533_v32 = vadd.f32 1.0, %v4098_v39  ;;  %v4322_v19 = vld [vmem:[#allocation30_spill] sm:$0xff]  ;;  %v4323_v27 = vld [vmem:[#allocation27_spill] sm:$0xff] }
 0x2b9   : > { %v1446_v49 = vadd.f32 %v1414_v42, %v4130_v37  ;;  %v1564_v56 = vmul.f32 0.5, %v1532_v22  ;;  %v1561_v30 = vmul.f32 0.5, %v1529_v14  ;;  %v1530_v60 = vadd.f32 1.0, %v4076_v50  ;;  %v4324_v22 = vld [vmem:[#allocation37_spill] sm:$0xff] }
 0x2ba   : > { %2020 = vmatmul.bf16.gmra.mxu3 %v1655_v9  ;;  %v1415_v38 = vmul.f32 0.044715, %v1383_v0  ;;  %v1592_v17 = vmul.f32 %v1560_v18, %v3963_v11  ;;  %v1565_v16 = vmul.f32 0.5, %v1533_v32  ;;  %v1534_v4 = vadd.f32 1.0, %v2974_v36 }
 0x2bb   : > { %v2986_v15 = vpop.eup %2985  ;;  %v1478_v59 = vmul.f32 0.7978846, %v1446_v49  ;;  %v1596_v58 = vmul.f32 %v1564_v56, %v4011_v3  ;;  %v1593_v13 = vmul.f32 %v1561_v30, %v3969_v7  ;;  %v1562_v24 = vmul.f32 0.5, %v1530_v60  ;;  %v4318_v3 = vld [vmem:[#allocation29_spill] sm:$0xff] }
 0x2bc   : > { %v1447_v39 = vadd.f32 %v1415_v38, %v4146_v45  ;;  %v1624_v20 = vmul.f32 %v1592_v17, %v3795_v51  ;;  %v1597_v31 = vmul.f32 %v1565_v16, %v4014_v53  ;;  %v1566_v50 = vmul.f32 0.5, %v1534_v4  ;;  %v4321_v51 = vld [vmem:[#allocation24_spill] sm:$0xff]  ;;  %v4326_v16 = vld [vmem:[#allocation31_spill] sm:$0xff] }
 0x2bd   : > { %v2988_v62 = vpop.eup %2987  ;;  %2989 = vtanh.f32 %v1478_v59  ;;  %v1628_v11 = vmul.f32 %v1596_v58, %v3811_v28  ;;  %v1625_v36 = vmul.f32 %v1593_v13, %v4317_v40  ;;  %v1594_v26 = vmul.f32 %v1562_v24, %v3981_v57 }
 0x2be   : > { %v1479_v25 = vmul.f32 0.7978846, %v1447_v39  ;;  %v1629_v5 = vmul.f32 %v1597_v31, %v4318_v3  ;;  %v1598_v7 = vmul.f32 %v1566_v50, %v4039_v23  ;;  %v1531_v35 = vadd.f32 1.0, %v4319_v1  ;;  %v4327_v39 = vld [vmem:[#allocation32_spill] sm:$0xff]  ;;  %v4328_v31 = vld [vmem:[#allocation35_spill] sm:$0xff]  ;;  %v4331_v3 = vld [vmem:[#allocation34_spill] sm:$0xff] }
 0x2bf   : > { %v970_v46 = vadd.f32 %v4321_v51, %v4320_v55  ;;  %v1656_v53 = vpack.c.bf16 %v1628_v11, %v1624_v20  ;;  %v1535_v10 = vadd.f32 1.0, %v4117_v47  ;;  %v1536_v44 = vadd.f32 1.0, %v4122_v8  ;;  %v4329_v11 = vld [vmem:[#allocation33_spill] sm:$0xff]  ;;  %v4332_v1 = vld [vmem:[#allocation23_spill] sm:$0xff] }
 0x2c0   : > { %2991 = vtanh.f32 %v1479_v25  ;;  %v1657_v28 = vpack.c.bf16 %v1629_v5, %v1625_v36  ;;  %v1630_v2 = vmul.f32 %v1598_v7, %v4322_v19  ;;  %v1563_v57 = vmul.f32 0.5, %v1531_v35  ;;  %v4333_v35 = vld [vmem:[#allocation21_spill] sm:$0xff] }
 0x2c1   : > { %1938 = vmatmul.bf16.gmra.mxu0 %v1656_v53  ;;  %v1567_v52 = vmul.f32 0.5, %v1535_v10  ;;  %v1540_v61 = vadd.f32 1.0, %v2986_v15  ;;  %v1568_v48 = vmul.f32 0.5, %v1536_v44  ;;  %v1537_v23 = vadd.f32 1.0, %v4126_v43  ;;  %v4325_v43 = vld [vmem:[#allocation28_spill] sm:$0xff]  ;;  %v4334_v51 = vld [vmem:[#allocation25_spill] sm:$0xff] }
 0x2c2   : > { %v1626_v42 = vmul.f32 %v1594_v26, %v4323_v27  ;;  %v1595_v14 = vmul.f32 %v1563_v57, %v4324_v22  ;;  %v1541_v9 = vadd.f32 1.0, %v2988_v62  ;;  %v1538_v47 = vadd.f32 1.0, %v4132_v29 }
 0x2c3   : > { %v2990_v0 = vpop.eup %2989  ;;  %v1599_v8 = vmul.f32 %v1567_v52, %v4042_v6  ;;  %v1572_v18 = vmul.f32 0.5, %v1540_v61  ;;  %v1600_v32 = vmul.f32 %v1568_v48, %v4049_v33  ;;  %v1569_v49 = vmul.f32 0.5, %v1537_v23  ;;  %v4205_v48 = vld [vmem:[%s4272_s6] ss:$0 sm:$0xff] }
 0x2c4   : > { %1967 = vmatmul.bf16.gmra.mxu1 %v1657_v28  ;;  %v1658_v56 = vpack.c.bf16 %v1630_v2, %v1626_v42  ;;  %v1573_v30 = vmul.f32 0.5, %v1541_v9  ;;  %v1542_v60 = vadd.f32 1.0, %v2990_v0  ;;  %v1570_v38 = vmul.f32 0.5, %v1538_v47 }
 0x2c5   : > { %v1627_v17 = vmul.f32 %v1595_v14, %v4325_v43  ;;  %v1631_v4 = vmul.f32 %v1599_v8, %v4326_v16  ;;  %v1604_v15 = vmul.f32 %v1572_v18, %v4088_v21  ;;  %v1601_v29 = vmul.f32 %v1569_v49, %v4052_v63  ;;  %v4330_v21 = vld [vmem:[#allocation36_spill] sm:$0xff] }
 0x2c6   : > { %v2992_v59 = vpop.eup %2991  ;;  %v1605_v6 = vmul.f32 %v1573_v30, %v4106_v54  ;;  %v1574_v58 = vmul.f32 0.5, %v1542_v60  ;;  %v1602_v33 = vmul.f32 %v1570_v38, %v4059_v34  ;;  %v1539_v13 = vadd.f32 1.0, %v4136_v41 }
 0x2c7   : > { %v1659_v24 = vpack.c.bf16 %v1631_v4, %v1627_v17  ;;  %v1632_v20 = vmul.f32 %v1600_v32, %v4327_v39  ;;  %v1636_v50 = vmul.f32 %v1604_v15, %v4328_v31  ;;  %v1543_v62 = vadd.f32 1.0, %v2992_v59 }
 0x2c8   : > { %1996 = vmatmul.bf16.gmra.mxu2 %v1658_v56  ;;  %v1633_v40 = vmul.f32 %v1601_v29, %v4329_v11  ;;  %v1637_v36 = vmul.f32 %v1605_v6, %v4330_v21  ;;  %v1606_v63 = vmul.f32 %v1574_v58, %v4130_v37  ;;  %v1571_v26 = vmul.f32 0.5, %v1539_v13 }
 0x2c9   : > { %v1660_v54 = vpack.c.bf16 %v1636_v50, %v1632_v20  ;;  %v1575_v25 = vmul.f32 0.5, %v1543_v62  ;;  %v1634_v41 = vmul.f32 %v1602_v33, %v4331_v3  ;;  %v997_v55 = vadd.f32 %v4333_v35, %v4332_v1 }
 0x2ca   : > { %2025 = vmatmul.bf16.gmra.mxu3 %v1659_v24  ;;  %v1661_v34 = vpack.c.bf16 %v1637_v36, %v1633_v40  ;;  %v1638_v5 = vmul.f32 %v1606_v63, %v970_v46  ;;  %v1603_v7 = vmul.f32 %v1571_v26, %v4062_v12  ;;  %v999_v53 = vadd.f32 %v4334_v51, %v4332_v1 }
 0x2cb   : > { %v1607_v10 = vmul.f32 %v1575_v25, %v4146_v45 }
 0x2cc   : > { %v1662_v44 = vpack.c.bf16 %v1638_v5, %v1634_v41  ;;  %v1635_v37 = vmul.f32 %v1603_v7, %v997_v55 }
 0x2cd   : > { %v1639_v28 = vmul.f32 %v1607_v10, %v999_v53 }
 0x2cf   : > { %v1663_v19 = vpack.c.bf16 %v1639_v28, %v1635_v37 }
 0x2d1   : > { %1943 = vmatmul.bf16.gmra.mxu0 %v1660_v54 }
 0x2d4   : > { %1972 = vmatmul.bf16.gmra.mxu1 %v1661_v34 }
 0x2d8   : > { %2001 = vmatmul.bf16.gmra.mxu2 %v1662_v44 }
 0x2da   : > { %2030 = vmatmul.bf16.gmra.mxu3 %v1663_v19 }
 0x314   : > { %v1929_v46 = vpop.f32.mrf.mxu0 }
 0x317   : > { %v1958_v2 = vpop.f32.mrf.mxu1 }
 0x318   : > { %v1959_v12 = vadd.f32 %v1958_v2, %v1929_v46 }
 0x31c   : > { %v1931_v45 = vpop.f32.mrf.mxu0 }
 0x31f   : > { %v1960_v27 = vpop.f32.mrf.mxu1 }
 0x320   : > { %v1961_v22 = vadd.f32 %v1960_v27, %v1931_v45 }
 0x321   : > { %v1987_v57 = vpop.f32.mrf.mxu2 }
 0x322   : > { %v1988_v52 = vadd.f32 %v1987_v57, %v1959_v12  ;;  %v2016_v61 = vpop.f32.mrf.mxu3 }
 0x324   : > { %v2017_v23 = vadd.f32 %v2016_v61, %v1988_v52 }
 0x326   : > { %v2067_v42 = vadd.f32 %v4205_v48, %v2017_v23 }
 0x328   : > { %2075 = vst [vmem:[%s4210_s3] sm:$0xff] %v2067_v42 }
 0x329   : > { %v1989_v14 = vpop.f32.mrf.mxu2 }
 0x32a   : > { %v1990_v9 = vadd.f32 %v1989_v14, %v1961_v22  ;;  %v2018_v47 = vpop.f32.mrf.mxu3 }
 0x32c   : > { %v2019_v0 = vadd.f32 %v2018_v47, %v1990_v9 }
 0x32d   : > { %v1934_v8 = vpop.f32.mrf.mxu0 }
 0x32e   : > { %v2068_v18 = vadd.f32 %v4205_v48, %v2019_v0 }
 0x330   : > { %2076 = vst [vmem:[%s4210_s3 + $0x8] sm:$0xff] %v2068_v18 }
 0x331   : > { %v1963_v32 = vpop.f32.mrf.mxu1 }
 0x332   : > { %v1964_v30 = vadd.f32 %v1963_v32, %v1934_v8 }
 0x335   : > { %v1936_v49 = vpop.f32.mrf.mxu0 }
 0x339   : > { %v1965_v56 = vpop.f32.mrf.mxu1 }
 0x33a   : > { %v1966_v29 = vadd.f32 %v1965_v56, %v1936_v49 }
 0x33b   : > { %v1992_v60 = vpop.f32.mrf.mxu2 }
 0x33c   : > { %v1993_v38 = vadd.f32 %v1992_v60, %v1964_v30 }
 0x33d   : > { %v2021_v43 = vpop.f32.mrf.mxu3 }
 0x33e   : > { %v2022_v17 = vadd.f32 %v2021_v43, %v1993_v38  ;;  %v1939_v4 = vpop.f32.mrf.mxu0 }
 0x340   : > { %v2069_v16 = vadd.f32 %v4205_v48, %v2022_v17 }
 0x341   : > { %v1968_v15 = vpop.f32.mrf.mxu1 }
 0x342   : > { %2077 = vst [vmem:[%s4210_s3 + $0x10] sm:$0xff] %v2069_v16  ;;  %v1969_v24 = vadd.f32 %v1968_v15, %v1939_v4 }
 0x343   : > { %v1994_v59 = vpop.f32.mrf.mxu2 }
 0x344   : > { %v1995_v6 = vadd.f32 %v1994_v59, %v1966_v29 }
 0x345   : > { %v2023_v58 = vpop.f32.mrf.mxu3 }
 0x346   : > { %v2024_v33 = vadd.f32 %v2023_v58, %v1995_v6  ;;  %v1941_v39 = vpop.f32.mrf.mxu0 }
 0x348   : > { %v2070_v13 = vadd.f32 %v4205_v48, %v2024_v33 }
 0x349   : > { %v1970_v20 = vpop.f32.mrf.mxu1 }
 0x34a   : > { %2078 = vst [vmem:[%s4210_s3 + $0x18] sm:$0xff] %v2070_v13  ;;  %v1971_v21 = vadd.f32 %v1970_v20, %v1941_v39 }
 0x34b   : > { %v1997_v31 = vpop.f32.mrf.mxu2 }
 0x34c   : > { %v1998_v50 = vadd.f32 %v1997_v31, %v1969_v24 }
 0x34d   : > { %v2026_v62 = vpop.f32.mrf.mxu3 }
 0x34e   : > { %v2027_v11 = vadd.f32 %v2026_v62, %v1998_v50  ;;  %v1944_v63 = vpop.f32.mrf.mxu0 }
 0x350   : > { %v2071_v40 = vadd.f32 %v4205_v48, %v2027_v11 }
 0x351   : > { %v1973_v54 = vpop.f32.mrf.mxu1 }
 0x352   : > { %2079 = vst [vmem:[%s4210_s3 + $0x20] sm:$0xff] %v2071_v40  ;;  %v1974_v41 = vadd.f32 %v1973_v54, %v1944_v63 }
 0x353   : > { %v1999_v36 = vpop.f32.mrf.mxu2 }
 0x354   : > { %v2000_v26 = vadd.f32 %v1999_v36, %v1971_v21 }
 0x355   : > { %v2028_v25 = vpop.f32.mrf.mxu3 }
 0x356   : > { %v2029_v34 = vadd.f32 %v2028_v25, %v2000_v26  ;;  %v1946_v55 = vpop.f32.mrf.mxu0 }
 0x358   : > { %v2072_v3 = vadd.f32 %v4205_v48, %v2029_v34 }
 0x359   : > { %v1975_v51 = vpop.f32.mrf.mxu1 }
 0x35a   : > { %2080 = vst [vmem:[%s4210_s3 + $0x28] sm:$0xff] %v2072_v3  ;;  %v1976_v10 = vadd.f32 %v1975_v51, %v1946_v55 }
 0x35b   : > { %v2002_v5 = vpop.f32.mrf.mxu2 }
 0x35c   : > { %v2003_v7 = vadd.f32 %v2002_v5, %v1974_v41 }
 0x35d   : > { %v2031_v1 = vpop.f32.mrf.mxu3 }
 0x35e   : > { %v2032_v35 = vadd.f32 %v2031_v1, %v2003_v7 }
 0x360   : > { %v2073_v53 = vadd.f32 %v4205_v48, %v2032_v35 }
 0x362   : > { %2081 = vst [vmem:[%s4210_s3 + $0x30] sm:$0xff] %v2073_v53 }
 0x363   : > { %v2004_v44 = vpop.f32.mrf.mxu2 }
 0x364   : > { %v2005_v37 = vadd.f32 %v2004_v44, %v1976_v10 }
 0x365   : > { %v2033_v28 = vpop.f32.mrf.mxu3 }
 0x366   : > { %v2034_v19 = vadd.f32 %v2033_v28, %v2005_v37 }
 0x368   : > { %v2074_v46 = vadd.f32 %v4205_v48, %v2034_v19 }
 0x36a   : > { %2082 = vst [vmem:[%s4210_s3 + $0x38] sm:$0xff] %v2074_v46 }
 0x36b   : > { %3200 = shalt.err (!%p3197_p13)
}
 0x36c   : > { %s3281_s4 = smov 128   ;;  %s3282_s1 = smov 8  }
 0x36d   : > { %2808 = dma.vmem_to_hbm [thread:$0]  (%p3424_p5), %s2097_s20, 1024, %s2099_s9, %s2084_s27, %s3281_s4, %s3281_s4, %s3282_s1  }
 0x36e PF: > { %s2113_s2 = sand.u32 1, %s3247_s24   ;;  %p2831_p0 = pnand %p2244_p4, %p3432_p7 }
 0x36f   : > { %s2114_s3 = scalar_lea.sflag [#allocation6], %s2113_s2 }
 0x370   : > { %p2832_p2 = pneg %p2831_p0 }
 0x372   : > { %3242 = dma.done.wait (%p2832_p2), %s2114_s3, 1024  }
 0x373   : > { %3244 = vsyncadd (%p2832_p2), %s2114_s3, 4294966272  ;;  %s26_s29 = sadd.s32 1, %s3267_s29   ;;  %s4335_s24 = smov %s3251_s25 }
 0x374   : > { %p23_p6 = scmp.ge.s32.totalorder %s26_s29, 4   ;;  %s4336_s25 = smov %s3255_s26 }
 0x375   : > { %s4337_s26 = smov %s3430_s21  ;;  %s4338_s27 = smov %s3263_s28 }
 0x376   : > { %s4339_s28 = smov %s4341_s13  ;;  %25 = sbr.rel (!%p23_p6) target bundleno = 14 (0xe), region = 126 }
 0x37b   :  { %2120 = vsyncpa [#allocation5], 1 }
 0x37c   :  { %2122 = vsyncpa [#allocation5 + $0x1], 1 }
 0x37d   :  { %2123 = vsyncpa [#allocation8], 1 }
 0x37e   :  { %2124 = vsyncpa [#allocation11], 1 }
 0x37f   :  { %2125 = vsyncpa [#allocation14], 1 }
 0x380   :  { %2126 = vsyncpa [#allocation6], 1 }
 0x381   :  { %2128 = vsyncpa [#allocation6 + $0x1], 1 }

</bundles_post_ra>
